<compile_context>
chip_gen: v7x
topology: tpu7x:2x2x1
jax: 0.10.0
libtpu: 0.0.40
codegen_flags: <defaults>
</compile_context>

<pallas_src>
import functools

import jax
import jax.numpy as jnp
from jax.experimental import pallas as pl
from jax.experimental.pallas import tpu as pltpu

# ----- model constants (from the PyTorch module) -----
GRAPH_EMB = 8                  # graph_embedding_size
NODE_F = 1 + GRAPH_EMB         # node feature dim: x[:, :1] + embedding
EDGE_F = 1                     # edge_attr dim
D_M_IN, D_M_HID, D_M_OUT = NODE_F + EDGE_F, 32, 32           # mlp_m: 10 -> 32 -> 32
D_U_IN, D_U_HID, D_U_OUT = NODE_F + D_M_OUT, 16, GRAPH_EMB   # mlp_u: 41 -> 16 -> 8
D_H_IN, D_H_HID, D_H_OUT = GRAPH_EMB, 16, 1                  # h2o : 8 -> 16 -> 1
N_LAYERS = 3

# ----- small test shapes (stand-in for train_K=20) -----
K = 8                          # nodes (links) per graph == number of LocalModels
B = 16                         # graphs (frames)
G_CHUNK = 8                    # graphs per grid step; multiple of 8 => tile-aligned reshapes
R = K - 1                      # outgoing edges per node (complete graph, no self loops)
N = B * K
E = B * K * R

MXU_DTYPE = jnp.bfloat16       # MXU operands; accumulation stays f32

assert B % G_CHUNK == 0 and G_CHUNK % 8 == 0


# ---------------------------------------------------------------------------
# Fused Pallas kernel: 3x LocalConv + h2o for a chunk of G graphs per grid step.
# All per-node weights are block-diagonal, so per-node MLPs are single matmuls
# over "striped" activations (node k occupies lane-stripe k).
# ---------------------------------------------------------------------------
def fused_mpnn_kernel(col0_ref, emb_ref, ea_ref,
                      w1x_ref, w1b_ref, w1e_ref, w1c0_ref, b1a_ref, b1b_ref,
                      w2x_ref, w2a_ref, w2c0_ref, b2a_ref, w2b_ref, b2b_ref,
                      w3_ref, b3_ref, w4_ref, b4_ref,
                      out_ref, *, n_layers):
    G, Kn = col0_ref.shape                 # graphs per chunk, nodes per graph
    RG = ea_ref.shape[1]                   # (K-1) * G edge rows per chunk
    Rn = RG // G
    C1 = Kn * D_M_OUT                      # striped message width  (K*32)

    def mm(a, w):
        # lane-dense MXU matmul: bf16 operands, f32 accumulation
        return jnp.dot(a.astype(w.dtype), w, preferred_element_type=jnp.float32)

    # ---- hoist all weight loads once (shared by the 3 weight-tied layers) ----
    w1x, w1b = w1x_ref[...], w1b_ref[...]
    w2x, w2a, w2b = w2x_ref[...], w2a_ref[...], w2b_ref[...]
    b1a, b1b = b1a_ref[...], b1b_ref[...]
    b2a, b2b = b2a_ref[...], b2b_ref[...]

    col0 = col0_ref[...]                   # (G, K)    x[:, :1], constant across layers
    emb = emb_ref[...]                     # (G, K*8)  striped node state (VMEM resident)

    # ---- layer-invariant terms, computed once for all three weight-shared layers ----
    # edge_attr contribution to message-MLP layer 1, per edge row (m-major, g-minor):
    ea_msg = mm(ea_ref[0], w1e_ref[...]).reshape(Rn, G, C1)        # (R, G, K*32)
    # x[:, :1] contribution + bias for message-MLP layer 1 (per node, broadcast over edges):
    msg_const = mm(col0, w1c0_ref[...]) + b1a                      # (G, K*32)
    # x[:, :1] contribution + bias for update-MLP layer 1:
    upd_const = mm(col0, w2c0_ref[...]) + b2a                      # (G, K*16)

    # ---- three weight-shared LocalConv layers (striped node state never leaves VMEM) ----
    for _ in range(n_layers):
        # message(): each node's mlp_m; x_j term computed once per node, broadcast to edges
        node_term = mm(emb, w1x) + msg_const                       # (G, K*32)
        h = jnp.maximum(ea_msg + node_term[None, :, :], 0.0)       # (R, G, K*32)
        h = jnp.maximum(mm(h.reshape(RG, C1), w1b) + b1b, 0.0)     # (R*G, K*32)
        # aggregate(aggr='sum'): sum over each node's K-1 outgoing edges
        aggr = jnp.sum(h.reshape(Rn, G, C1), axis=0)               # (G, K*32)
        # update(): mlp_u on cat([x, aggr]) as split block-diagonal matmuls (no lane concat)
        c = jnp.maximum(mm(emb, w2x) + mm(aggr, w2a) + upd_const, 0.0)   # (G, K*16)
        emb = jnp.maximum(mm(c, w2b) + b2b, 0.0)                   # (G, K*8)

    # ---- h2o head: Lin(8,16)+ReLU -> Lin(16,1)+Sigmoid, per node ----
    hh = jnp.maximum(mm(emb, w3_ref[...]) + b3_ref[...], 0.0)      # (G, K*16)
    z = mm(hh, w4_ref[...]) + b4_ref[...]                          # (G, K)
    out_ref[0] = jax.nn.sigmoid(z)                                 # one store per chunk


# ---------------------------------------------------------------------------
# Host-side weight packing helpers (block-diagonal / stripe-scatter matrices)
# ---------------------------------------------------------------------------
def _block_diag(w):
    """(K, din, dout) per-node weights -> (K*din, K*dout) block-diagonal matrix."""
    Kn, din, dout = w.shape
    eye = jnp.eye(Kn, dtype=w.dtype)
    return jnp.einsum('kio,kl->kilo', w, eye).reshape(Kn * din, Kn * dout)


def _cost_estimate(weights, x0, edge_attr):
    per_graph_layer = 2 * (K * GRAPH_EMB * K * D_M_OUT
                           + R * (K * D_M_OUT) * (K * D_M_OUT)
                           + K * GRAPH_EMB * K * D_U_HID
                           + (K * D_M_OUT) * (K * D_U_HID)
                           + (K * D_U_HID) * (K * GRAPH_EMB))
    per_graph_once = 2 * (R * K * (K * D_M_OUT)          # edge_attr scatter matmul
                          + K * (K * D_M_OUT)            # col0 -> msg const
                          + K * (K * D_U_HID)            # col0 -> upd const
                          + K * GRAPH_EMB * K * D_H_HID  # h2o layer 1
                          + (K * D_H_HID) * K)           # h2o layer 2
    flops = B * (N_LAYERS * per_graph_layer + per_graph_once)
    bytes_accessed = (sum(int(w.size) * w.dtype.itemsize for w in weights)
                      + int(x0.size) * x0.dtype.itemsize
                      + int(edge_attr.size) * edge_attr.dtype.itemsize
                      + N * 4)
    return pl.CostEstimate(flops=int(flops), transcendentals=int(B * K),
                           bytes_accessed=int(bytes_accessed))


# ---------------------------------------------------------------------------
# Wrapper: single fused pallas_call for the whole forward pass
# ---------------------------------------------------------------------------
def distributed_mpnn_forward(x0, edge_attr, edge_index, params):
    # edge_index is only needed for its ordering convention: edges must be grouped
    # by (graph, source, target) -- what build_edge_index() produces -- so that
    # edge_attr.reshape(B, K, K-1) lines up with each source node's edge group.
    # (Ordering is asserted host-side in __main__.)
    del edge_index

    num_chunks = B // G_CHUNK
    f32, mxu = jnp.float32, MXU_DTYPE

    # ---- data, striped per graph chunk ----
    col0 = x0[:, 0].reshape(B, K)                                     # x[:, :1]
    emb0 = x0[:, 1:].reshape(B, K * GRAPH_EMB)                        # x[:, 1:], node-striped
    ea = (edge_attr.reshape(num_chunks, G_CHUNK, K, R)                # (chunk, g, src, m)
          .transpose(0, 3, 1, 2)                                      # (chunk, m, g, src)
          .reshape(num_chunks, R * G_CHUNK, K))                       # edge rows: m-major, g-minor

    # ---- per-node weights packed as block-diagonal / stripe-scatter matrices ----
    # (built once per call with plain XLA ops; negligible vs the kernel)
    w1a, w2a = params["w1a"], params["w2a"]
    weights = [
        _block_diag(w1a[:, 1:1 + GRAPH_EMB, :]).astype(mxu),   # w1x  (K*8,  K*32)
        _block_diag(params["w1b"]).astype(mxu),                # w1b  (K*32, K*32)
        _block_diag(w1a[:, 1 + GRAPH_EMB:, :]).astype(mxu),    # w1e  (K,    K*32)
        _block_diag(w1a[:, :1, :]).astype(mxu),                # w1c0 (K,    K*32)
        params["b1a"].reshape(1, -1).astype(f32),              # (1, K*32)
        params["b1b"].reshape(1, -1).astype(f32),              # (1, K*32)
        _block_diag(w2a[:, 1:1 + GRAPH_EMB, :]).astype(mxu),   # w2x  (K*8,  K*16)
        _block_diag(w2a[:, 1 + GRAPH_EMB:, :]).astype(mxu),    # w2a  (K*32, K*16)
        _block_diag(w2a[:, :1, :]).astype(mxu),                # w2c0 (K,    K*16)
        params["b2a"].reshape(1, -1).astype(f32),              # (1, K*16)
        _block_diag(params["w2b"]).astype(mxu),                # w2b  (K*16, K*8)
        params["b2b"].reshape(1, -1).astype(f32),              # (1, K*8)
        _block_diag(params["w3"]).astype(mxu),                 # w3   (K*8,  K*16)
        params["b3"].reshape(1, -1).astype(f32),               # (1, K*16)
        _block_diag(params["w4"]).astype(mxu),                 # w4   (K*16, K)
        params["b4"].reshape(1, -1).astype(f32),               # (1, K)
    ]

    data_specs = [
        pl.BlockSpec((G_CHUNK, K), lambda b: (b, 0)),
        pl.BlockSpec((G_CHUNK, K * GRAPH_EMB), lambda b: (b, 0)),
        pl.BlockSpec((1, R * G_CHUNK, K), lambda b: (b, 0, 0)),
    ]
    # constant index maps: weight blocks are fetched once and stay in VMEM.
    weight_specs = [pl.BlockSpec(w.shape, lambda b: (0, 0)) for w in weights]

    out = pl.pallas_call(
        functools.partial(fused_mpnn_kernel, n_layers=N_LAYERS),
        out_shape=jax.ShapeDtypeStruct((num_chunks, G_CHUNK, K), jnp.float32),
        grid=(num_chunks,),
        in_specs=data_specs + weight_specs,
        out_specs=pl.BlockSpec((1, G_CHUNK, K), lambda b: (b, 0, 0)),
        compiler_params=pltpu.CompilerParams(dimension_semantics=("parallel",)),
        cost_estimate=_cost_estimate(weights, x0, edge_attr),
    )(col0, emb0, ea, *weights)

    return out.reshape(N, 1)                                   # per-node transmit power


def build_edge_index():
    """Complete directed graph per graph, edges ordered by (graph, source, target)."""
    src, dst = [], []
    for b in range(B):
        for s in range(K):
            for t in range(K):
                if t != s:
                    src.append(b * K + s)
                    dst.append(b * K + t)
    return jnp.array([src, dst], dtype=jnp.int32)


# ---------------------------------------------------------------------------
# Pure-JAX reference (same math, generic edge_index handling) for a sanity check
# ---------------------------------------------------------------------------
def distributed_mpnn_ref(x0, edge_attr, edge_index, p):
    src = edge_index[0]                        # (E,) source node of every edge
    e_node = src % K                           # LocalModel used per edge (by source)
    n_node = jnp.arange(N) % K                 # LocalModel of each node

    def conv(x):
        tmp = jnp.concatenate([x[src], edge_attr], axis=1)                       # (E, 10)
        h = jax.nn.relu(jnp.einsum('ed,edh->eh', tmp, p["w1a"][e_node]) + p["b1a"][e_node])
        h = jax.nn.relu(jnp.einsum('ed,edh->eh', h, p["w1b"][e_node]) + p["b1b"][e_node])
        aggr = jax.ops.segment_sum(h, src, num_segments=N)                       # (N, 32)
        t = jnp.concatenate([x, aggr], axis=1)                                   # (N, 41)
        c = jax.nn.relu(jnp.einsum('nd,ndh->nh', t, p["w2a"][n_node]) + p["b2a"][n_node])
        c = jax.nn.relu(jnp.einsum('nd,ndh->nh', c, p["w2b"][n_node]) + p["b2b"][n_node])
        return jnp.concatenate([x[:, :1], c], axis=1)

    x = conv(conv(conv(x0)))
    h = jax.nn.relu(jnp.einsum('nd,ndh->nh', x[:, 1:], p["w3"][n_node]) + p["b3"][n_node])
    return jax.nn.sigmoid(jnp.einsum('nd,ndh->nh', h, p["w4"][n_node]) + p["b4"][n_node])


# ---------------------------------------------------------------------------
def init_params(key):
    """Deterministic synthetic per-node weights, stored as (K, in, out) / (K, out)."""
    dims = {
        "w1a": (K, D_M_IN, D_M_HID), "b1a": (K, D_M_HID),
        "w1b": (K, D_M_HID, D_M_OUT), "b1b": (K, D_M_OUT),
        "w2a": (K, D_U_IN, D_U_HID), "b2a": (K, D_U_HID),
        "w2b": (K, D_U_HID, D_U_OUT), "b2b": (K, D_U_OUT),
        "w3": (K, D_H_IN, D_H_HID), "b3": (K, D_H_HID),
        "w4": (K, D_H_HID, D_H_OUT), "b4": (K, D_H_OUT),
    }
    params = {}
    keys = jax.random.split(key, len(dims))
    for k_rng, (name, shape) in zip(keys, dims.items()):
        params[name] = (0.1 * jax.random.normal(k_rng, shape)).astype(jnp.float32)
    return params


if __name__ == "__main__":
    key = jax.random.PRNGKey(0)
    k_x, k_e, k_p = jax.random.split(key, 3)

    x0 = jax.random.normal(k_x, (N, NODE_F), dtype=jnp.float32)         # data.x
    edge_attr = jax.random.normal(k_e, (E, EDGE_F), dtype=jnp.float32)  # data.edge_attr
    edge_index = build_edge_index()                                     # data.edge_index
    params = init_params(k_p)

    # the kernel assumes edge_attr is grouped by (graph, source, target); assert it.
    assert bool(jnp.array_equal(edge_index, build_edge_index())), \
        "edge_index/edge_attr must be ordered by (graph, source, target)"

    out = jax.jit(distributed_mpnn_forward)(x0, edge_attr, edge_index, params)
    out = jax.block_until_ready(out)

    ref = distributed_mpnn_ref(x0, edge_attr, edge_index, params)
    assert out.shape == (N, 1)
    # bf16 MXU operands (f32 accumulate) vs f32 reference -> slightly loose tolerance.
    max_diff = float(jnp.max(jnp.abs(out - ref)))
    assert jnp.allclose(out, ref, atol=2e-2, rtol=2e-2), f"mismatch vs reference: {max_diff}"

    # TODO(synk): LocalH2O is not defined in the source; assumed to apply each node's
    #             own h2o MLP to out[:, 1:] (per-node, like LocalConv).
    # TODO(synk): computeLocalRate / computeFrameRate, gradient averaging and the
    #             optimizer steps in forward() are host-side training bookkeeping,
    #             not forward-pass kernel math, and are intentionally omitted.
    print("KERNEL_OK")
</pallas_src>

<mosaic_0001>
module attributes {stable_mosaic.version = 11 : i64} {
  func.func @fused_mpnn_kernel(%arg0: i32, %arg1: memref<8x8xf32, #tpu.memory_space<vmem>>, %arg2: memref<8x64xf32, #tpu.memory_space<vmem>>, %arg3: memref<1x56x8xf32, #tpu.memory_space<vmem>>, %arg4: memref<64x256xbf16, #tpu.memory_space<vmem>>, %arg5: memref<256x256xbf16, #tpu.memory_space<vmem>>, %arg6: memref<8x256xbf16, #tpu.memory_space<vmem>>, %arg7: memref<8x256xbf16, #tpu.memory_space<vmem>>, %arg8: memref<1x256xf32, #tpu.memory_space<vmem>>, %arg9: memref<1x256xf32, #tpu.memory_space<vmem>>, %arg10: memref<64x128xbf16, #tpu.memory_space<vmem>>, %arg11: memref<256x128xbf16, #tpu.memory_space<vmem>>, %arg12: memref<8x128xbf16, #tpu.memory_space<vmem>>, %arg13: memref<1x128xf32, #tpu.memory_space<vmem>>, %arg14: memref<128x64xbf16, #tpu.memory_space<vmem>>, %arg15: memref<1x64xf32, #tpu.memory_space<vmem>>, %arg16: memref<64x128xbf16, #tpu.memory_space<vmem>>, %arg17: memref<1x128xf32, #tpu.memory_space<vmem>>, %arg18: memref<128x8xbf16, #tpu.memory_space<vmem>>, %arg19: memref<1x8xf32, #tpu.memory_space<vmem>>, %arg20: memref<1x8x8xf32, #tpu.memory_space<vmem>>) attributes {dimension_semantics = [#tpu.dimension_semantics<parallel>], iteration_bounds = array<i64: 2>, scalar_prefetch = 0 : i64, scratch_operands = 0 : i64, tpu.core_type = #tpu.core_type<tc>, window_params = [{transform_indices = @transform_0, window_bounds = array<i64: 8, 8>}, {transform_indices = @transform_1, window_bounds = array<i64: 8, 64>}, {transform_indices = @transform_2, window_bounds = array<i64: 1, 56, 8>}, {pipeline_mode = #tpu.pipeline_mode<synchronous>, transform_indices = @transform_3, window_bounds = array<i64: 64, 256>}, {pipeline_mode = #tpu.pipeline_mode<synchronous>, transform_indices = @transform_4, window_bounds = array<i64: 256, 256>}, {pipeline_mode = #tpu.pipeline_mode<synchronous>, transform_indices = @transform_5, window_bounds = array<i64: 8, 256>}, {pipeline_mode = #tpu.pipeline_mode<synchronous>, transform_indices = @transform_6, window_bounds = array<i64: 8, 256>}, {pipeline_mode = #tpu.pipeline_mode<synchronous>, transform_indices = @transform_7, window_bounds = array<i64: 1, 256>}, {pipeline_mode = #tpu.pipeline_mode<synchronous>, transform_indices = @transform_8, window_bounds = array<i64: 1, 256>}, {pipeline_mode = #tpu.pipeline_mode<synchronous>, transform_indices = @transform_9, window_bounds = array<i64: 64, 128>}, {pipeline_mode = #tpu.pipeline_mode<synchronous>, transform_indices = @transform_10, window_bounds = array<i64: 256, 128>}, {pipeline_mode = #tpu.pipeline_mode<synchronous>, transform_indices = @transform_11, window_bounds = array<i64: 8, 128>}, {pipeline_mode = #tpu.pipeline_mode<synchronous>, transform_indices = @transform_12, window_bounds = array<i64: 1, 128>}, {pipeline_mode = #tpu.pipeline_mode<synchronous>, transform_indices = @transform_13, window_bounds = array<i64: 128, 64>}, {pipeline_mode = #tpu.pipeline_mode<synchronous>, transform_indices = @transform_14, window_bounds = array<i64: 1, 64>}, {pipeline_mode = #tpu.pipeline_mode<synchronous>, transform_indices = @transform_15, window_bounds = array<i64: 64, 128>}, {pipeline_mode = #tpu.pipeline_mode<synchronous>, transform_indices = @transform_16, window_bounds = array<i64: 1, 128>}, {pipeline_mode = #tpu.pipeline_mode<synchronous>, transform_indices = @transform_17, window_bounds = array<i64: 128, 8>}, {pipeline_mode = #tpu.pipeline_mode<synchronous>, transform_indices = @transform_18, window_bounds = array<i64: 1, 8>}, {transform_indices = @transform_19, window_bounds = array<i64: 1, 8, 8>}]} {
    %c0 = arith.constant 0 : index
    %c0_0 = arith.constant 0 : index
    %0 = vector.load %arg4[%c0, %c0_0] : memref<64x256xbf16, #tpu.memory_space<vmem>>, vector<64x256xbf16>
    %c0_1 = arith.constant 0 : index
    %c0_2 = arith.constant 0 : index
    %1 = vector.load %arg5[%c0_1, %c0_2] : memref<256x256xbf16, #tpu.memory_space<vmem>>, vector<256x256xbf16>
    %c0_3 = arith.constant 0 : index
    %c0_4 = arith.constant 0 : index
    %2 = vector.load %arg10[%c0_3, %c0_4] : memref<64x128xbf16, #tpu.memory_space<vmem>>, vector<64x128xbf16>
    %c0_5 = arith.constant 0 : index
    %c0_6 = arith.constant 0 : index
    %3 = vector.load %arg11[%c0_5, %c0_6] : memref<256x128xbf16, #tpu.memory_space<vmem>>, vector<256x128xbf16>
    %c0_7 = arith.constant 0 : index
    %c0_8 = arith.constant 0 : index
    %4 = vector.load %arg14[%c0_7, %c0_8] : memref<128x64xbf16, #tpu.memory_space<vmem>>, vector<128x64xbf16>
    %c0_9 = arith.constant 0 : index
    %c0_10 = arith.constant 0 : index
    %5 = vector.load %arg8[%c0_9, %c0_10] : memref<1x256xf32, #tpu.memory_space<vmem>>, vector<1x256xf32>
    %c0_11 = arith.constant 0 : index
    %c0_12 = arith.constant 0 : index
    %6 = vector.load %arg9[%c0_11, %c0_12] : memref<1x256xf32, #tpu.memory_space<vmem>>, vector<1x256xf32>
    %c0_13 = arith.constant 0 : index
    %c0_14 = arith.constant 0 : index
    %7 = vector.load %arg13[%c0_13, %c0_14] : memref<1x128xf32, #tpu.memory_space<vmem>>, vector<1x128xf32>
    %c0_15 = arith.constant 0 : index
    %c0_16 = arith.constant 0 : index
    %8 = vector.load %arg15[%c0_15, %c0_16] : memref<1x64xf32, #tpu.memory_space<vmem>>, vector<1x64xf32>
    %c0_17 = arith.constant 0 : index
    %c0_18 = arith.constant 0 : index
    %9 = vector.load %arg1[%c0_17, %c0_18] : memref<8x8xf32, #tpu.memory_space<vmem>>, vector<8x8xf32>
    %c0_19 = arith.constant 0 : index
    %c0_20 = arith.constant 0 : index
    %10 = vector.load %arg2[%c0_19, %c0_20] : memref<8x64xf32, #tpu.memory_space<vmem>>, vector<8x64xf32>
    %c0_21 = arith.constant 0 : index
    %c0_22 = arith.constant 0 : index
    %c0_23 = arith.constant 0 : index
    %11 = vector.load %arg3[%c0_21, %c0_22, %c0_23] : memref<1x56x8xf32, #tpu.memory_space<vmem>>, vector<1x56x8xf32>
    %12 = vector.shape_cast %11 : vector<1x56x8xf32> to vector<56x8xf32>
    %c0_24 = arith.constant 0 : index
    %c0_25 = arith.constant 0 : index
    %13 = vector.load %arg6[%c0_24, %c0_25] : memref<8x256xbf16, #tpu.memory_space<vmem>>, vector<8x256xbf16>
    %14 = arith.truncf %12 : vector<56x8xf32> to vector<56x8xbf16>
    %cst = arith.constant dense<0.000000e+00> : vector<56x256xf32>
    %15 = tpu.matmul %14, %13, %cst {dimension_numbers = #tpu.dot_dimension_numbers<[1], [0], [0], [1], [0, 0, 1, 1], [], []>} : vector<56x8xbf16>, vector<8x256xbf16>, vector<56x256xf32> -> vector<56x256xf32>
    %16 = vector.shape_cast %15 : vector<56x256xf32> to vector<7x8x256xf32>
    %c0_26 = arith.constant 0 : index
    %c0_27 = arith.constant 0 : index
    %17 = vector.load %arg7[%c0_26, %c0_27] : memref<8x256xbf16, #tpu.memory_space<vmem>>, vector<8x256xbf16>
    %18 = arith.truncf %9 : vector<8x8xf32> to vector<8x8xbf16>
    %cst_28 = arith.constant dense<0.000000e+00> : vector<8x256xf32>
    %19 = tpu.matmul %18, %17, %cst_28 {dimension_numbers = #tpu.dot_dimension_numbers<[1], [0], [0], [1], [0, 0, 1, 1], [], []>} : vector<8x8xbf16>, vector<8x256xbf16>, vector<8x256xf32> -> vector<8x256xf32>
    %20 = vector.broadcast %5 : vector<1x256xf32> to vector<8x256xf32>
    %21 = arith.addf %19, %20 : vector<8x256xf32>
    %c0_29 = arith.constant 0 : index
    %c0_30 = arith.constant 0 : index
    %22 = vector.load %arg12[%c0_29, %c0_30] : memref<8x128xbf16, #tpu.memory_space<vmem>>, vector<8x128xbf16>
    %23 = arith.truncf %9 : vector<8x8xf32> to vector<8x8xbf16>
    %cst_31 = arith.constant dense<0.000000e+00> : vector<8x128xf32>
    %24 = tpu.matmul %23, %22, %cst_31 {dimension_numbers = #tpu.dot_dimension_numbers<[1], [0], [0], [1], [0, 0, 1, 1], [], []>} : vector<8x8xbf16>, vector<8x128xbf16>, vector<8x128xf32> -> vector<8x128xf32>
    %25 = vector.broadcast %7 : vector<1x128xf32> to vector<8x128xf32>
    %26 = arith.addf %24, %25 : vector<8x128xf32>
    %27 = arith.truncf %10 : vector<8x64xf32> to vector<8x64xbf16>
    %cst_32 = arith.constant dense<0.000000e+00> : vector<8x256xf32>
    %28 = tpu.matmul %27, %0, %cst_32 {dimension_numbers = #tpu.dot_dimension_numbers<[1], [0], [0], [1], [0, 0, 1, 1], [], []>} : vector<8x64xbf16>, vector<64x256xbf16>, vector<8x256xf32> -> vector<8x256xf32>
    %29 = arith.addf %28, %21 : vector<8x256xf32>
    %30 = vector.shape_cast %29 : vector<8x256xf32> to vector<1x8x256xf32>
    %31 = vector.broadcast %30 : vector<1x8x256xf32> to vector<7x8x256xf32>
    %32 = arith.addf %16, %31 : vector<7x8x256xf32>
    %cst_33 = arith.constant 0.000000e+00 : f32
    %33 = vector.broadcast %cst_33 : f32 to vector<7x8x256xf32>
    %34 = arith.maximumf %32, %33 : vector<7x8x256xf32>
    %35 = vector.shape_cast %34 : vector<7x8x256xf32> to vector<56x256xf32>
    %36 = arith.truncf %35 : vector<56x256xf32> to vector<56x256xbf16>
    %cst_34 = arith.constant dense<0.000000e+00> : vector<56x256xf32>
    %37 = tpu.matmul %36, %1, %cst_34 {dimension_numbers = #tpu.dot_dimension_numbers<[1], [0], [0], [1], [0, 0, 1, 1], [], []>} : vector<56x256xbf16>, vector<256x256xbf16>, vector<56x256xf32> -> vector<56x256xf32>
    %38 = vector.broadcast %6 : vector<1x256xf32> to vector<56x256xf32>
    %39 = arith.addf %37, %38 : vector<56x256xf32>
    %cst_35 = arith.constant 0.000000e+00 : f32
    %40 = vector.broadcast %cst_35 : f32 to vector<56x256xf32>
    %41 = arith.maximumf %39, %40 : vector<56x256xf32>
    %42 = vector.shape_cast %41 : vector<56x256xf32> to vector<7x8x256xf32>
    %cst_36 = arith.constant dense<0.000000e+00> : vector<8x256xf32>
    %43 = vector.multi_reduction <add>, %42, %cst_36 [0] : vector<7x8x256xf32> to vector<8x256xf32>
    %44 = arith.truncf %10 : vector<8x64xf32> to vector<8x64xbf16>
    %cst_37 = arith.constant dense<0.000000e+00> : vector<8x128xf32>
    %45 = tpu.matmul %44, %2, %cst_37 {dimension_numbers = #tpu.dot_dimension_numbers<[1], [0], [0], [1], [0, 0, 1, 1], [], []>} : vector<8x64xbf16>, vector<64x128xbf16>, vector<8x128xf32> -> vector<8x128xf32>
    %46 = arith.truncf %43 : vector<8x256xf32> to vector<8x256xbf16>
    %cst_38 = arith.constant dense<0.000000e+00> : vector<8x128xf32>
    %47 = tpu.matmul %46, %3, %cst_38 {dimension_numbers = #tpu.dot_dimension_numbers<[1], [0], [0], [1], [0, 0, 1, 1], [], []>} : vector<8x256xbf16>, vector<256x128xbf16>, vector<8x128xf32> -> vector<8x128xf32>
    %48 = arith.addf %45, %47 : vector<8x128xf32>
    %49 = arith.addf %48, %26 : vector<8x128xf32>
    %cst_39 = arith.constant 0.000000e+00 : f32
    %50 = vector.broadcast %cst_39 : f32 to vector<8x128xf32>
    %51 = arith.maximumf %49, %50 : vector<8x128xf32>
    %52 = arith.truncf %51 : vector<8x128xf32> to vector<8x128xbf16>
    %cst_40 = arith.constant dense<0.000000e+00> : vector<8x64xf32>
    %53 = tpu.matmul %52, %4, %cst_40 {dimension_numbers = #tpu.dot_dimension_numbers<[1], [0], [0], [1], [0, 0, 1, 1], [], []>} : vector<8x128xbf16>, vector<128x64xbf16>, vector<8x64xf32> -> vector<8x64xf32>
    %54 = vector.broadcast %8 : vector<1x64xf32> to vector<8x64xf32>
    %55 = arith.addf %53, %54 : vector<8x64xf32>
    %cst_41 = arith.constant 0.000000e+00 : f32
    %56 = vector.broadcast %cst_41 : f32 to vector<8x64xf32>
    %57 = arith.maximumf %55, %56 : vector<8x64xf32>
    %58 = arith.truncf %57 : vector<8x64xf32> to vector<8x64xbf16>
    %cst_42 = arith.constant dense<0.000000e+00> : vector<8x256xf32>
    %59 = tpu.matmul %58, %0, %cst_42 {dimension_numbers = #tpu.dot_dimension_numbers<[1], [0], [0], [1], [0, 0, 1, 1], [], []>} : vector<8x64xbf16>, vector<64x256xbf16>, vector<8x256xf32> -> vector<8x256xf32>
    %60 = arith.addf %59, %21 : vector<8x256xf32>
    %61 = vector.shape_cast %60 : vector<8x256xf32> to vector<1x8x256xf32>
    %62 = vector.broadcast %61 : vector<1x8x256xf32> to vector<7x8x256xf32>
    %63 = arith.addf %16, %62 : vector<7x8x256xf32>
    %cst_43 = arith.constant 0.000000e+00 : f32
    %64 = vector.broadcast %cst_43 : f32 to vector<7x8x256xf32>
    %65 = arith.maximumf %63, %64 : vector<7x8x256xf32>
    %66 = vector.shape_cast %65 : vector<7x8x256xf32> to vector<56x256xf32>
    %67 = arith.truncf %66 : vector<56x256xf32> to vector<56x256xbf16>
    %cst_44 = arith.constant dense<0.000000e+00> : vector<56x256xf32>
    %68 = tpu.matmul %67, %1, %cst_44 {dimension_numbers = #tpu.dot_dimension_numbers<[1], [0], [0], [1], [0, 0, 1, 1], [], []>} : vector<56x256xbf16>, vector<256x256xbf16>, vector<56x256xf32> -> vector<56x256xf32>
    %69 = vector.broadcast %6 : vector<1x256xf32> to vector<56x256xf32>
    %70 = arith.addf %68, %69 : vector<56x256xf32>
    %cst_45 = arith.constant 0.000000e+00 : f32
    %71 = vector.broadcast %cst_45 : f32 to vector<56x256xf32>
    %72 = arith.maximumf %70, %71 : vector<56x256xf32>
    %73 = vector.shape_cast %72 : vector<56x256xf32> to vector<7x8x256xf32>
    %cst_46 = arith.constant dense<0.000000e+00> : vector<8x256xf32>
    %74 = vector.multi_reduction <add>, %73, %cst_46 [0] : vector<7x8x256xf32> to vector<8x256xf32>
    %75 = arith.truncf %57 : vector<8x64xf32> to vector<8x64xbf16>
    %cst_47 = arith.constant dense<0.000000e+00> : vector<8x128xf32>
    %76 = tpu.matmul %75, %2, %cst_47 {dimension_numbers = #tpu.dot_dimension_numbers<[1], [0], [0], [1], [0, 0, 1, 1], [], []>} : vector<8x64xbf16>, vector<64x128xbf16>, vector<8x128xf32> -> vector<8x128xf32>
    %77 = arith.truncf %74 : vector<8x256xf32> to vector<8x256xbf16>
    %cst_48 = arith.constant dense<0.000000e+00> : vector<8x128xf32>
    %78 = tpu.matmul %77, %3, %cst_48 {dimension_numbers = #tpu.dot_dimension_numbers<[1], [0], [0], [1], [0, 0, 1, 1], [], []>} : vector<8x256xbf16>, vector<256x128xbf16>, vector<8x128xf32> -> vector<8x128xf32>
    %79 = arith.addf %76, %78 : vector<8x128xf32>
    %80 = arith.addf %79, %26 : vector<8x128xf32>
    %cst_49 = arith.constant 0.000000e+00 : f32
    %81 = vector.broadcast %cst_49 : f32 to vector<8x128xf32>
    %82 = arith.maximumf %80, %81 : vector<8x128xf32>
    %83 = arith.truncf %82 : vector<8x128xf32> to vector<8x128xbf16>
    %cst_50 = arith.constant dense<0.000000e+00> : vector<8x64xf32>
    %84 = tpu.matmul %83, %4, %cst_50 {dimension_numbers = #tpu.dot_dimension_numbers<[1], [0], [0], [1], [0, 0, 1, 1], [], []>} : vector<8x128xbf16>, vector<128x64xbf16>, vector<8x64xf32> -> vector<8x64xf32>
    %85 = vector.broadcast %8 : vector<1x64xf32> to vector<8x64xf32>
    %86 = arith.addf %84, %85 : vector<8x64xf32>
    %cst_51 = arith.constant 0.000000e+00 : f32
    %87 = vector.broadcast %cst_51 : f32 to vector<8x64xf32>
    %88 = arith.maximumf %86, %87 : vector<8x64xf32>
    %89 = arith.truncf %88 : vector<8x64xf32> to vector<8x64xbf16>
    %cst_52 = arith.constant dense<0.000000e+00> : vector<8x256xf32>
    %90 = tpu.matmul %89, %0, %cst_52 {dimension_numbers = #tpu.dot_dimension_numbers<[1], [0], [0], [1], [0, 0, 1, 1], [], []>} : vector<8x64xbf16>, vector<64x256xbf16>, vector<8x256xf32> -> vector<8x256xf32>
    %91 = arith.addf %90, %21 : vector<8x256xf32>
    %92 = vector.shape_cast %91 : vector<8x256xf32> to vector<1x8x256xf32>
    %93 = vector.broadcast %92 : vector<1x8x256xf32> to vector<7x8x256xf32>
    %94 = arith.addf %16, %93 : vector<7x8x256xf32>
    %cst_53 = arith.constant 0.000000e+00 : f32
    %95 = vector.broadcast %cst_53 : f32 to vector<7x8x256xf32>
    %96 = arith.maximumf %94, %95 : vector<7x8x256xf32>
    %97 = vector.shape_cast %96 : vector<7x8x256xf32> to vector<56x256xf32>
    %98 = arith.truncf %97 : vector<56x256xf32> to vector<56x256xbf16>
    %cst_54 = arith.constant dense<0.000000e+00> : vector<56x256xf32>
    %99 = tpu.matmul %98, %1, %cst_54 {dimension_numbers = #tpu.dot_dimension_numbers<[1], [0], [0], [1], [0, 0, 1, 1], [], []>} : vector<56x256xbf16>, vector<256x256xbf16>, vector<56x256xf32> -> vector<56x256xf32>
    %100 = vector.broadcast %6 : vector<1x256xf32> to vector<56x256xf32>
    %101 = arith.addf %99, %100 : vector<56x256xf32>
    %cst_55 = arith.constant 0.000000e+00 : f32
    %102 = vector.broadcast %cst_55 : f32 to vector<56x256xf32>
    %103 = arith.maximumf %101, %102 : vector<56x256xf32>
    %104 = vector.shape_cast %103 : vector<56x256xf32> to vector<7x8x256xf32>
    %cst_56 = arith.constant dense<0.000000e+00> : vector<8x256xf32>
    %105 = vector.multi_reduction <add>, %104, %cst_56 [0] : vector<7x8x256xf32> to vector<8x256xf32>
    %106 = arith.truncf %88 : vector<8x64xf32> to vector<8x64xbf16>
    %cst_57 = arith.constant dense<0.000000e+00> : vector<8x128xf32>
    %107 = tpu.matmul %106, %2, %cst_57 {dimension_numbers = #tpu.dot_dimension_numbers<[1], [0], [0], [1], [0, 0, 1, 1], [], []>} : vector<8x64xbf16>, vector<64x128xbf16>, vector<8x128xf32> -> vector<8x128xf32>
    %108 = arith.truncf %105 : vector<8x256xf32> to vector<8x256xbf16>
    %cst_58 = arith.constant dense<0.000000e+00> : vector<8x128xf32>
    %109 = tpu.matmul %108, %3, %cst_58 {dimension_numbers = #tpu.dot_dimension_numbers<[1], [0], [0], [1], [0, 0, 1, 1], [], []>} : vector<8x256xbf16>, vector<256x128xbf16>, vector<8x128xf32> -> vector<8x128xf32>
    %110 = arith.addf %107, %109 : vector<8x128xf32>
    %111 = arith.addf %110, %26 : vector<8x128xf32>
    %cst_59 = arith.constant 0.000000e+00 : f32
    %112 = vector.broadcast %cst_59 : f32 to vector<8x128xf32>
    %113 = arith.maximumf %111, %112 : vector<8x128xf32>
    %114 = arith.truncf %113 : vector<8x128xf32> to vector<8x128xbf16>
    %cst_60 = arith.constant dense<0.000000e+00> : vector<8x64xf32>
    %115 = tpu.matmul %114, %4, %cst_60 {dimension_numbers = #tpu.dot_dimension_numbers<[1], [0], [0], [1], [0, 0, 1, 1], [], []>} : vector<8x128xbf16>, vector<128x64xbf16>, vector<8x64xf32> -> vector<8x64xf32>
    %116 = vector.broadcast %8 : vector<1x64xf32> to vector<8x64xf32>
    %117 = arith.addf %115, %116 : vector<8x64xf32>
    %cst_61 = arith.constant 0.000000e+00 : f32
    %118 = vector.broadcast %cst_61 : f32 to vector<8x64xf32>
    %119 = arith.maximumf %117, %118 : vector<8x64xf32>
    %c0_62 = arith.constant 0 : index
    %c0_63 = arith.constant 0 : index
    %120 = vector.load %arg16[%c0_62, %c0_63] : memref<64x128xbf16, #tpu.memory_space<vmem>>, vector<64x128xbf16>
    %121 = arith.truncf %119 : vector<8x64xf32> to vector<8x64xbf16>
    %cst_64 = arith.constant dense<0.000000e+00> : vector<8x128xf32>
    %122 = tpu.matmul %121, %120, %cst_64 {dimension_numbers = #tpu.dot_dimension_numbers<[1], [0], [0], [1], [0, 0, 1, 1], [], []>} : vector<8x64xbf16>, vector<64x128xbf16>, vector<8x128xf32> -> vector<8x128xf32>
    %c0_65 = arith.constant 0 : index
    %c0_66 = arith.constant 0 : index
    %123 = vector.load %arg17[%c0_65, %c0_66] : memref<1x128xf32, #tpu.memory_space<vmem>>, vector<1x128xf32>
    %124 = vector.broadcast %123 : vector<1x128xf32> to vector<8x128xf32>
    %125 = arith.addf %122, %124 : vector<8x128xf32>
    %cst_67 = arith.constant 0.000000e+00 : f32
    %126 = vector.broadcast %cst_67 : f32 to vector<8x128xf32>
    %127 = arith.maximumf %125, %126 : vector<8x128xf32>
    %c0_68 = arith.constant 0 : index
    %c0_69 = arith.constant 0 : index
    %128 = vector.load %arg18[%c0_68, %c0_69] : memref<128x8xbf16, #tpu.memory_space<vmem>>, vector<128x8xbf16>
    %129 = arith.truncf %127 : vector<8x128xf32> to vector<8x128xbf16>
    %cst_70 = arith.constant dense<0.000000e+00> : vector<8x8xf32>
    %130 = tpu.matmul %129, %128, %cst_70 {dimension_numbers = #tpu.dot_dimension_numbers<[1], [0], [0], [1], [0, 0, 1, 1], [], []>} : vector<8x128xbf16>, vector<128x8xbf16>, vector<8x8xf32> -> vector<8x8xf32>
    %c0_71 = arith.constant 0 : index
    %c0_72 = arith.constant 0 : index
    %131 = vector.load %arg19[%c0_71, %c0_72] : memref<1x8xf32, #tpu.memory_space<vmem>>, vector<1x8xf32>
    %132 = vector.broadcast %131 : vector<1x8xf32> to vector<8x8xf32>
    %133 = arith.addf %130, %132 : vector<8x8xf32>
    %134 = arith.negf %133 : vector<8x8xf32>
    %135 = math.exp %134 : vector<8x8xf32>
    %cst_73 = arith.constant 1.000000e+00 : f32
    %136 = vector.broadcast %cst_73 : f32 to vector<8x8xf32>
    %137 = arith.addf %136, %135 : vector<8x8xf32>
    %138 = arith.divf %136, %137 : vector<8x8xf32>
    %c0_74 = arith.constant 0 : index
    %c0_75 = arith.constant 0 : index
    %c0_76 = arith.constant 0 : index
    %139 = vector.load %arg20[%c0_74, %c0_75, %c0_76] : memref<1x8x8xf32, #tpu.memory_space<vmem>>, vector<1x8x8xf32>
    %140 = vector.shape_cast %139 : vector<1x8x8xf32> to vector<8x8xf32>
    %141 = vector.shape_cast %138 : vector<8x8xf32> to vector<1x8x8xf32>
    tpu.vector_store %arg20[%c0_74, %c0_75, %c0_76], %141 {strides = array<i32>} : memref<1x8x8xf32, #tpu.memory_space<vmem>>, vector<1x8x8xf32>,
    return
  }
  func.func @transform_0(%arg0: i32) -> (i32, i32) {
    %c0_i32 = arith.constant 0 : i32
    %c0_i32_0 = arith.constant 0 : i32
    return %arg0, %c0_i32 : i32, i32
  }
  func.func @transform_1(%arg0: i32) -> (i32, i32) {
    %c0_i32 = arith.constant 0 : i32
    %c0_i32_0 = arith.constant 0 : i32
    return %arg0, %c0_i32 : i32, i32
  }
  func.func @transform_2(%arg0: i32) -> (i32, i32, i32) {
    %c0_i32 = arith.constant 0 : i32
    %c0_i32_0 = arith.constant 0 : i32
    %c0_i32_1 = arith.constant 0 : i32
    return %arg0, %c0_i32, %c0_i32_0 : i32, i32, i32
  }
  func.func @transform_3(%arg0: i32) -> (i32, i32) {
    %c0_i32 = arith.constant 0 : i32
    %c0_i32_0 = arith.constant 0 : i32
    %c0_i32_1 = arith.constant 0 : i32
    return %c0_i32, %c0_i32_0 : i32, i32
  }
  func.func @transform_4(%arg0: i32) -> (i32, i32) {
    %c0_i32 = arith.constant 0 : i32
    %c0_i32_0 = arith.constant 0 : i32
    %c0_i32_1 = arith.constant 0 : i32
    return %c0_i32, %c0_i32_0 : i32, i32
  }
  func.func @transform_5(%arg0: i32) -> (i32, i32) {
    %c0_i32 = arith.constant 0 : i32
    %c0_i32_0 = arith.constant 0 : i32
    %c0_i32_1 = arith.constant 0 : i32
    return %c0_i32, %c0_i32_0 : i32, i32
  }
  func.func @transform_6(%arg0: i32) -> (i32, i32) {
    %c0_i32 = arith.constant 0 : i32
    %c0_i32_0 = arith.constant 0 : i32
    %c0_i32_1 = arith.constant 0 : i32
    return %c0_i32, %c0_i32_0 : i32, i32
  }
  func.func @transform_7(%arg0: i32) -> (i32, i32) {
    %c0_i32 = arith.constant 0 : i32
    %c0_i32_0 = arith.constant 0 : i32
    %c0_i32_1 = arith.constant 0 : i32
    return %c0_i32, %c0_i32_0 : i32, i32
  }
  func.func @transform_8(%arg0: i32) -> (i32, i32) {
    %c0_i32 = arith.constant 0 : i32
    %c0_i32_0 = arith.constant 0 : i32
    %c0_i32_1 = arith.constant 0 : i32
    return %c0_i32, %c0_i32_0 : i32, i32
  }
  func.func @transform_9(%arg0: i32) -> (i32, i32) {
    %c0_i32 = arith.constant 0 : i32
    %c0_i32_0 = arith.constant 0 : i32
    %c0_i32_1 = arith.constant 0 : i32
    return %c0_i32, %c0_i32_0 : i32, i32
  }
  func.func @transform_10(%arg0: i32) -> (i32, i32) {
    %c0_i32 = arith.constant 0 : i32
    %c0_i32_0 = arith.constant 0 : i32
    %c0_i32_1 = arith.constant 0 : i32
    return %c0_i32, %c0_i32_0 : i32, i32
  }
  func.func @transform_11(%arg0: i32) -> (i32, i32) {
    %c0_i32 = arith.constant 0 : i32
    %c0_i32_0 = arith.constant 0 : i32
    %c0_i32_1 = arith.constant 0 : i32
    return %c0_i32, %c0_i32_0 : i32, i32
  }
  func.func @transform_12(%arg0: i32) -> (i32, i32) {
    %c0_i32 = arith.constant 0 : i32
    %c0_i32_0 = arith.constant 0 : i32
    %c0_i32_1 = arith.constant 0 : i32
    return %c0_i32, %c0_i32_0 : i32, i32
  }
  func.func @transform_13(%arg0: i32) -> (i32, i32) {
    %c0_i32 = arith.constant 0 : i32
    %c0_i32_0 = arith.constant 0 : i32
    %c0_i32_1 = arith.constant 0 : i32
    return %c0_i32, %c0_i32_0 : i32, i32
  }
  func.func @transform_14(%arg0: i32) -> (i32, i32) {
    %c0_i32 = arith.constant 0 : i32
    %c0_i32_0 = arith.constant 0 : i32
    %c0_i32_1 = arith.constant 0 : i32
    return %c0_i32, %c0_i32_0 : i32, i32
  }
  func.func @transform_15(%arg0: i32) -> (i32, i32) {
    %c0_i32 = arith.constant 0 : i32
    %c0_i32_0 = arith.constant 0 : i32
    %c0_i32_1 = arith.constant 0 : i32
    return %c0_i32, %c0_i32_0 : i32, i32
  }
  func.func @transform_16(%arg0: i32) -> (i32, i32) {
    %c0_i32 = arith.constant 0 : i32
    %c0_i32_0 = arith.constant 0 : i32
    %c0_i32_1 = arith.constant 0 : i32
    return %c0_i32, %c0_i32_0 : i32, i32
  }
  func.func @transform_17(%arg0: i32) -> (i32, i32) {
    %c0_i32 = arith.constant 0 : i32
    %c0_i32_0 = arith.constant 0 : i32
    %c0_i32_1 = arith.constant 0 : i32
    return %c0_i32, %c0_i32_0 : i32, i32
  }
  func.func @transform_18(%arg0: i32) -> (i32, i32) {
    %c0_i32 = arith.constant 0 : i32
    %c0_i32_0 = arith.constant 0 : i32
    %c0_i32_1 = arith.constant 0 : i32
    return %c0_i32, %c0_i32_0 : i32, i32
  }
  func.func @transform_19(%arg0: i32) -> (i32, i32, i32) {
    %c0_i32 = arith.constant 0 : i32
    %c0_i32_0 = arith.constant 0 : i32
    %c0_i32_1 = arith.constant 0 : i32
    return %arg0, %c0_i32, %c0_i32_0 : i32, i32, i32
  }
}

</mosaic_0001>

<bundles_post_ra>
// kernel: squeeze.1
= control target key start
LH: loop header
LB: loop body
LE: loop exit
PB: predicated region body
PF: predicated region fallthrough
CT: control target
= control target key end

     0   :  { %s130_s8 = smov 104   ;;  %s131_s9 = smov 112   ;;  %vm7_vm0 = vcmask 64512   ;;  %s221_s0 = inlined_call_operand.vmem [shape: f32[128], index: 0, kind: input, shape index: {}]   ;;  %s222_s1 = inlined_call_operand.vmem [shape: f32[16,8], index: 1, kind: output, shape index: {}]  }
   0x1   :  { %v4_v0 = vld [vmem:[%s221_s0] sm:$0x1]  ;;  %s129_s0 = smov 120   ;;  %s132_s10 = smov 96  }
   0x2   :  { %5 = vst [vmem:[#allocation0] sm:$0x1] %v4_v0  ;;  %s133_s11 = smov 88   ;;  %s134_s12 = smov 80  }
   0x3   :  { %s135_s13 = smov 72   ;;  %s136_s14 = smov 64  }
   0x4   :  { %s137_s17 = smov 56   ;;  %s138_s18 = smov 48  }
   0x5   :  { %s139_s19 = smov 40   ;;  %s140_s20 = smov 32  }
   0x6   :  { %s141_s21 = smov 24   ;;  %s142_s22 = smov 16  }
   0x7   :  { %s143_s23 = smov 8  }
   0x9   :  { %v9_v1 = vld [vmem:[#allocation0] sm:$0x1]  }
   0xa   :  { %v21_v2 = vld [vmem:[#allocation0] sm:$0x1]   ;;  %10 = vrot.lane.b32.xlu0 %v9_v1, %s129_s0 }
   0xb   :  { %22 = vrot.lane.b32.xlu1 %v21_v2, %s130_s8  ;;  %v15_v3 = vld [vmem:[#allocation0] sm:$0x1]  }
   0xc   :  { %v27_v4 = vld [vmem:[#allocation0] sm:$0x1]  }
   0xd   :  { %v33_v5 = vld [vmem:[#allocation0] sm:$0x1]  }
   0xe   :  { %16 = vrot.lane.b32.xlu0 %v15_v3, %s131_s9  ;;  %v39_v6 = vld [vmem:[#allocation0] sm:$0x1]  }
   0xf   :  { %28 = vrot.lane.b32.xlu1 %v27_v4, %s132_s10  ;;  %v45_v7 = vld [vmem:[#allocation0] sm:$0x1]  }
  0x10   :  { %v51_v8 = vld [vmem:[#allocation0] sm:$0x1]  }
  0x11   :  { %v57_v9 = vld [vmem:[#allocation0] sm:$0x1]  }
  0x12   :  { %34 = vrot.lane.b32.xlu0 %v33_v5, %s133_s11  ;;  %v63_v10 = vld [vmem:[#allocation0] sm:$0x1]  }
  0x13   :  { %40 = vrot.lane.b32.xlu1 %v39_v6, %s134_s12  ;;  %v6_v11 = vld [vmem:[#allocation0] sm:$0x1]  }
  0x14   :  { %8 = vst.msk [vmem:[%s222_s1] sm:$0x1] %vm7_vm0, %v6_v11   ;;  %v69_v12 = vld [vmem:[#allocation0] sm:$0x1]  }
  0x15   :  { %v75_v13 = vld [vmem:[#allocation0] sm:$0x1]  }
  0x16   :  { %46 = vrot.lane.b32.xlu0 %v45_v7, %s135_s13  ;;  %v81_v14 = vld [vmem:[#allocation0] sm:$0x1]  }
  0x17   :  { %52 = vrot.lane.b32.xlu1 %v51_v8, %s136_s14  ;;  %v87_v15 = vld [vmem:[#allocation0] sm:$0x1]  }
  0x18   :  { %v93_v16 = vld [vmem:[#allocation0] sm:$0x1]  }
  0x1a   :  { %58 = vrot.lane.b32.xlu0 %v57_v9, %s137_s17 }
  0x1b   :  { %64 = vrot.lane.b32.xlu1 %v63_v10, %s138_s18 }
  0x1e   :  { %70 = vrot.lane.b32.xlu0 %v69_v12, %s139_s19 }
  0x1f   :  { %76 = vrot.lane.b32.xlu1 %v75_v13, %s140_s20 }
  0x22   :  { %82 = vrot.lane.b32.xlu0 %v81_v14, %s141_s21 }
  0x23   :  { %88 = vrot.lane.b32.xlu1 %v87_v15, %s142_s22 }
  0x26   :  { %94 = vrot.lane.b32.xlu0 %v93_v16, %s143_s23 }
  0x7c   :  { %v11_v17 = vpop.permute.xlu0 %10  }
  0x7d   :  { %v23_v18 = vpop.permute.xlu1 %22   ;;  %99 = vst.msk [vmem:[%s222_s1 + $0x1] sm:$0x1] %vm7_vm0, %v11_v17  }
  0x7e   :  { %101 = vst.msk [vmem:[%s222_s1 + $0x3] sm:$0x1] %vm7_vm0, %v23_v18  }
  0x80   :  { %v17_v19 = vpop.permute.xlu0 %16  }
  0x81   :  { %v29_v20 = vpop.permute.xlu1 %28   ;;  %100 = vst.msk [vmem:[%s222_s1 + $0x2] sm:$0x1] %vm7_vm0, %v17_v19  }
  0x82   :  { %102 = vst.msk [vmem:[%s222_s1 + $0x4] sm:$0x1] %vm7_vm0, %v29_v20  }
  0x84   :  { %v35_v21 = vpop.permute.xlu0 %34  }
  0x85   :  { %v41_v22 = vpop.permute.xlu1 %40   ;;  %103 = vst.msk [vmem:[%s222_s1 + $0x5] sm:$0x1] %vm7_vm0, %v35_v21  }
  0x86   :  { %104 = vst.msk [vmem:[%s222_s1 + $0x6] sm:$0x1] %vm7_vm0, %v41_v22  }
  0x88   :  { %v47_v23 = vpop.permute.xlu0 %46  }
  0x89   :  { %v53_v24 = vpop.permute.xlu1 %52   ;;  %105 = vst.msk [vmem:[%s222_s1 + $0x7] sm:$0x1] %vm7_vm0, %v47_v23  }
  0x8a   :  { %106 = vst.msk [vmem:[%s222_s1 + $0x8] sm:$0x1] %vm7_vm0, %v53_v24  }
  0x8c   :  { %v59_v25 = vpop.permute.xlu0 %58  }
  0x8d   :  { %v65_v26 = vpop.permute.xlu1 %64   ;;  %107 = vst.msk [vmem:[%s222_s1 + $0x9] sm:$0x1] %vm7_vm0, %v59_v25  }
  0x8e   :  { %108 = vst.msk [vmem:[%s222_s1 + $0xa] sm:$0x1] %vm7_vm0, %v65_v26  }
  0x90   :  { %v71_v27 = vpop.permute.xlu0 %70  }
  0x91   :  { %v77_v28 = vpop.permute.xlu1 %76   ;;  %109 = vst.msk [vmem:[%s222_s1 + $0xb] sm:$0x1] %vm7_vm0, %v71_v27  }
  0x92   :  { %110 = vst.msk [vmem:[%s222_s1 + $0xc] sm:$0x1] %vm7_vm0, %v77_v28  }
  0x94   :  { %v83_v29 = vpop.permute.xlu0 %82  }
  0x95   :  { %v89_v30 = vpop.permute.xlu1 %88   ;;  %111 = vst.msk [vmem:[%s222_s1 + $0xd] sm:$0x1] %vm7_vm0, %v83_v29  }
  0x96   :  { %112 = vst.msk [vmem:[%s222_s1 + $0xe] sm:$0x1] %vm7_vm0, %v89_v30  }
  0x98   :  { %v95_v31 = vpop.permute.xlu0 %94  }
  0x99   :  { %113 = vst.msk [vmem:[%s222_s1 + $0xf] sm:$0x1] %vm7_vm0, %v95_v31  }

// kernel: distributed_mpnn_forward.1
= control target key start
LH: loop header
LB: loop body
LE: loop exit
PB: predicated region body
PF: predicated region fallthrough
CT: control target
= control target key end

     0   :  { %s4119_s0 = inlined_call_operand.vmem [shape: f32[16,8], index: 0, kind: input, shape index: {}]   ;;  %s4120_s1 = inlined_call_operand.vmem [shape: f32[16,64], index: 1, kind: input, shape index: {}]   ;;  %s4121_s2 = inlined_call_operand.vmem [shape: f32[2,56,8], index: 2, kind: input, shape index: {}]   ;;  %s4122_s3 = inlined_call_operand.vmem [shape: bf16[64,256], index: 3, kind: input, shape index: {}]   ;;  %s4123_s4 = inlined_call_operand.vmem [shape: bf16[256,256], index: 4, kind: input, shape index: {}]   ;;  %s4124_s5 = inlined_call_operand.vmem [shape: bf16[8,256], index: 5, kind: input, shape index: {}]   ;;  %s4125_s6 = inlined_call_operand.vmem [shape: bf16[8,256], index: 6, kind: input, shape index: {}]   ;;  %s4126_s7 = inlined_call_operand.vmem [shape: f32[1,256], index: 7, kind: input, shape index: {}]   ;;  %s4127_s8 = inlined_call_operand.vmem [shape: f32[1,256], index: 8, kind: input, shape index: {}]   ;;  %s4128_s9 = inlined_call_operand.vmem [shape: bf16[64,128], index: 9, kind: input, shape index: {}]   ;;  %s4129_s10 = inlined_call_operand.vmem [shape: bf16[256,128], index: 10, kind: input, shape index: {}]   ;;  %s4130_s11 = inlined_call_operand.vmem [shape: bf16[8,128], index: 11, kind: input, shape index: {}]   ;;  %s4131_s12 = inlined_call_operand.vmem [shape: f32[1,128], index: 12, kind: input, shape index: {}]   ;;  %s4132_s13 = inlined_call_operand.vmem [shape: bf16[128,64], index: 13, kind: input, shape index: {}]   ;;  %s4133_s14 = inlined_call_operand.vmem [shape: f32[1,64], index: 14, kind: input, shape index: {}]   ;;  %s4134_s15 = inlined_call_operand.vmem [shape: bf16[64,128], index: 15, kind: input, shape index: {}]   ;;  %s4135_s16 = inlined_call_operand.vmem [shape: f32[1,128], index: 16, kind: input, shape index: {}]   ;;  %s4136_s17 = inlined_call_operand.vmem [shape: bf16[128,8], index: 17, kind: input, shape index: {}]   ;;  %s4137_s18 = inlined_call_operand.vmem [shape: f32[1,8], index: 18, kind: input, shape index: {}]   ;;  %s4138_s19 = inlined_call_operand.vmem [shape: f32[2,8,8], index: 19, kind: output, shape index: {}]  }
   0x1   :  { %4220 = sst [smem:[#allocation45_spill]] %s4119_s0  ;;  %s3170_s0 = smov 0  }
   0x2   :  { %4221 = sst [smem:[#allocation46_spill]] %s4120_s1 }
   0x3   :  { %4222 = sst [smem:[#allocation47_spill]] %s4121_s2 }
   0x4   :  { %4223 = sst [smem:[#allocation48_spill]] %s4122_s3 }
   0x5 LB: > { %s2542_s30 = sadd.s32 4294967295, %s3065_s0   ;;  %p2546_p0 = scmp.ge.s32.totalorder %s3065_s0, 1  ;;  %s3065_s0 = sphi %s3170_s0, %s29_s0  }
   0x6   : > { %p555_p1 = scmp.lt.s32.totalorder %s3065_s0, 3 }
   0x8   : > { %p556_p2 = pnand %p2546_p0, %p555_p1 }
   0xa   : > { %559 = sbr.rel (%p556_p2) target bundleno = 3276 (0xccc), region = 96 }
  0x11   : > { %vm768_vm0 = vcmask 1043456   ;;  %v846_v0 = vld [vmem:[%s4125_s6] sm:$0xff]  ;;  %p618_p3 = scmp.lt.s32.totalorder %s2542_s30, 1  ;;  %v4140_v6 = vmov 0   ;;  %v4142_v10 = vmov 0.0   ;;  %s4224_s27 = sld [smem:[#allocation45_spill]] }
  0x12   : > { %v745_v1 = vld [vmem:[%s4124_s5] sm:$0xff]  ;;  %v2559_v2 = vcombine.high %v846_v0, %v846_v0  ;;  %v2558_v3 = vcombine.low %v846_v0, %v846_v0  ;;  %905 = vmatprep.mubr.bf16.mxu1 %v4140_v6  ;;  %807 = vmatprep.mubr.bf16.mxu0 %v4140_v6  ;;  %s4225_s21 = sld [smem:[#allocation47_spill]]  ;;  %vm755_vm1 = vcmask 64512   ;;  %s4226_s24 = sld [smem:[#allocation48_spill]]  ;;  %vm3069_vm2 = vmmov 0  }
  0x13   : > { %v2552_v4 = vcombine.high %v745_v1, %v745_v1  ;;  %v2551_v5 = vcombine.low %v745_v1, %v745_v1  ;;  %s4342_s30 = smov (!%p618_p3, %s2542_s30), 1  ;;  %v914_v9 = vld [vmem:[%s4130_s11] sm:$0xf]  ;;  %v3228_v21 = vld [vmem:[%s4123_s4 + $0x4] ss:$8 sps:$4 sm:$0xff]   ;;  %vm1005_vm3 = vcmask 523264  }
  0x14   : > { %2560 = vmatprep.subr.msk.bf16.mxu1 %vm768_vm0, %v2559_v2  ;;  %v868_v7 = vsel %vm768_vm0, %v2558_v3, 0  ;;  %s3190_s2 = sshll.u32 %s4342_s30, 3  ;;  %s2915_s23 = smul.u32 56, %s4342_s30  ;;  %v922_v13 = vsel %vm768_vm0, %v914_v9, 0  ;;  %v3223_v20 = vld [vmem:[%s4123_s4] ss:$8 sps:$4 sm:$0xff]  }
  0x15   : > { %2553 = vmatprep.subr.msk.bf16.mxu0 %vm768_vm0, %v2552_v4  ;;  %v770_v8 = vsel %vm768_vm0, %v2551_v5, 0  ;;  %874 = vmatpush1.bf16.msra.mxu1 %v868_v7  ;;  %v3235_v22 = vld [vmem:[%s4123_s4 + $0x14] ss:$8 sps:$4 sm:$0xff]   ;;  %v3252_v26 = vld [vmem:[%s4123_s4 + $0x10] ss:$8 sps:$4 sm:$0xff]   ;;  %s634_s22 = scalar_lea.vmem %s4138_s19, %s3190_s2 }
  0x16   : > { %776 = vmatpush1.bf16.msra.mxu0 %v770_v8  ;;  %2781 = vmatprep.subr.bf16.mxu1 %v4142_v10  ;;  %v3258_v27 = vld [vmem:[%s4123_s4 + $0x24] ss:$8 sps:$4 sm:$0xff]   ;;  %v3281_v32 = vld [vmem:[%s4123_s4 + $0x20] ss:$8 sps:$4 sm:$0xff]   ;;  %v3301_v35 = vld [vmem:[%s4123_s4 + $0x34] ss:$8 sps:$4 sm:$0xff]  }
  0x17   : > { %s621_s28 = scalar_lea.vmem %s4224_s27, %s3190_s2  ;;  %1257 = vmatprep.subr.bf16.mxu0 %v3228_v21  ;;  %s4234_s27 = sld [smem:[#allocation46_spill]]  ;;  %v3307_v37 = vld [vmem:[%s4123_s4 + $0x30] ss:$8 sps:$4 sm:$0xff]   ;;  %v3313_v38 = vld [vmem:[%s4123_s4 + $0x44] ss:$8 sps:$4 sm:$0xff]  }
  0x18   : > { %s3203_s1 = scalar_lea.vmem %s4225_s21, %s2915_s23  ;;  %v736_v11 = vld [vmem:[%s621_s28] sm:$0xff]  ;;  %v3246_v25 = vld [vmem:[%s4226_s24 + $0x14] ss:$8 sps:$4 sm:$0xff]   ;;  %v3265_v28 = vld [vmem:[%s4226_s24 + $0x10] ss:$8 sps:$4 sm:$0xff]  }
  0x19   : > { %v847_v12 = vpack.c.bf16 %v736_v11, %v736_v11  ;;  %v738_v14 = vld [vmem:[%s3203_s1] sm:$0xff]  ;;  %v739_v15 = vld [vmem:[%s3203_s1 + $0x8] sm:$0xff]  ;;  %v740_v18 = vld [vmem:[%s3203_s1 + $0x10] sm:$0xff]  ;;  %4229 = vst [vmem:[#allocation4_spill] sm:$0xff] %v3246_v25 }
  0x1a   : > { %v3211_v16 = vld [vmem:[%s4226_s24 + $0x4] ss:$8 sps:$4 sm:$0xff]   ;;  %v746_v17 = vpack.c.bf16 %v739_v15, %v738_v14  ;;  %v741_v19 = vld [vmem:[%s3203_s1 + $0x18] sm:$0xff]  ;;  %v3240_v23 = vld [vmem:[%s4226_s24] ss:$8 sps:$4 sm:$0xff]   ;;  %4230 = vst [vmem:[#allocation5_spill] sm:$0xff] %v3265_v28 }
  0x1b   : > { %4227 = vst [vmem:[#allocation2_spill] sm:$0xff] %v3211_v16  ;;  %2561 = vmatmul.mubr.msk.bf16.vlgmr.msra.gmra.mrb[0].mxu1 %vm755_vm1, %v847_v12  ;;  %4228 = vst [vmem:[#allocation3_spill] sm:$0xff] %v3240_v23  ;;  %v747_v24 = vpack.c.bf16 %v741_v19, %v740_v18  ;;  %v3270_v29 = vld [vmem:[%s4226_s24 + $0x24] ss:$8 sps:$4 sm:$0xff]   ;;  %v3286_v33 = vld [vmem:[%s4226_s24 + $0x20] ss:$8 sps:$4 sm:$0xff]  }
  0x1c   : > { %2782 = vmatpush3.bf16.msra.mxu1 %v922_v13  ;;  %2554 = vmatmul.mubr.msk.bf16.vlgmr.msra.gmra.mrb[0].mxu0 %vm755_vm1, %v746_v17  ;;  %4231 = vst [vmem:[#allocation6_spill] sm:$0xff] %v3270_v29  ;;  %v742_v30 = vld [vmem:[%s3203_s1 + $0x20] sm:$0xff]  ;;  %v743_v31 = vld [vmem:[%s3203_s1 + $0x28] sm:$0xff]  ;;  %4232 = vst [vmem:[#allocation7_spill] sm:$0xff] %v3286_v33  ;;  %v849_v13 = vlaneseq }
  0x1d   : > { %2783 = vmatprep.mubr.msk.bf16.mxu1 %vm3069_vm2, %v4142_v10  ;;  %1009 = vmatprep.subr.bf16.mxu1 %v3211_v16  ;;  %v3291_v34 = vld [vmem:[%s4226_s24 + $0x34] ss:$8 sps:$4 sm:$0xff]   ;;  %s625_s28 = scalar_lea.vmem %s4234_s27, %s3190_s2  ;;  %v748_v36 = vpack.c.bf16 %v743_v31, %v742_v30  ;;  %v3318_v39 = vld [vmem:[%s4226_s24 + $0x30] ss:$8 sps:$4 sm:$0xff]   ;;  %v3328_v42 = vld [vmem:[%s4123_s4 + $0x40] ss:$8 sps:$4 sm:$0xff]  }
  0x1e   : > { %817 = vmatprep.mubr.bf16.mxu0 %v4140_v6  ;;  %1258 = vmatpush1.bf16.msra.mxu0 %v3223_v20  ;;  %4233 = vst [vmem:[#allocation8_spill] sm:$0xff] %v3291_v34  ;;  %4235 = vst [vmem:[#allocation9_spill] sm:$0xff] %v3318_v39  ;;  %v737_v40 = vld [vmem:[%s625_s28] sm:$0xff]  ;;  %v744_v41 = vld [vmem:[%s3203_s1 + $0x30] sm:$0xff] }
  0x1f   : > { %1259 = vmatprep.subr.bf16.mxu0 %v3235_v22  ;;  %v3335_v43 = vld [vmem:[%s4123_s4 + $0x54] ss:$8 sps:$4 sm:$0xff]   ;;  %v3338_v44 = vpack.c.bf16 %v737_v40, %v737_v40  ;;  %v749_v45 = vpack.c.bf16 %v744_v41, %v744_v41  ;;  %v3345_v46 = vld [vmem:[%s4123_s4 + $0x50] ss:$8 sps:$4 sm:$0xff]   ;;  %v3350_v47 = vld [vmem:[%s4123_s4 + $0x64] ss:$8 sps:$4 sm:$0xff]  }
  0x20   : > { %v3360_v48 = vld [vmem:[%s4123_s4 + $0x60] ss:$8 sps:$4 sm:$0xff]   ;;  %v3365_v49 = vld [vmem:[%s4123_s4 + $0x74] ss:$8 sps:$4 sm:$0xff]   ;;  %v3372_v50 = vld [vmem:[%s4123_s4 + $0x70] ss:$8 sps:$4 sm:$0xff]  }
  0x21   : > { %v3380_v51 = vld [vmem:[%s4123_s4 + $0x84] ss:$8 sps:$4 sm:$0xff]   ;;  %v3385_v52 = vld [vmem:[%s4123_s4 + $0x80] ss:$8 sps:$4 sm:$0xff]   ;;  %v3391_v53 = vld [vmem:[%s4123_s4 + $0x94] ss:$8 sps:$4 sm:$0xff]  }
  0x22   : > { %1260 = vmatpush1.bf16.msra.mxu0 %v3252_v26  ;;  %v3397_v54 = vld [vmem:[%s4123_s4 + $0x90] ss:$8 sps:$4 sm:$0xff]   ;;  %v3404_v55 = vld [vmem:[%s4123_s4 + $0xa4] ss:$8 sps:$4 sm:$0xff]   ;;  %v3409_v56 = vld [vmem:[%s4123_s4 + $0xa0] ss:$8 sps:$4 sm:$0xff]  }
  0x23   : > { %2784 = vmatmul.mubr.msk.bf16.vlgmr.msra.gmra.mrb[4].mxu1 %vm755_vm1, %v847_v12  ;;  %1261 = vmatprep.subr.bf16.mxu0 %v3258_v27  ;;  %v3415_v57 = vld [vmem:[%s4123_s4 + $0xb4] ss:$8 sps:$4 sm:$0xff]   ;;  %v3421_v58 = vld [vmem:[%s4123_s4 + $0xb0] ss:$8 sps:$4 sm:$0xff]   ;;  %v3427_v59 = vld [vmem:[%s4123_s4 + $0xc4] ss:$8 sps:$4 sm:$0xff]  }
  0x24   : > { %1010 = vmatpush1.bf16.msra.mxu1 %v3240_v23  ;;  %2555 = vmatmul.mubr.msk.bf16.gmra.mrb[4].mxu0 %vm755_vm1, %v747_v24  ;;  %v3433_v60 = vld [vmem:[%s4123_s4 + $0xc0] ss:$8 sps:$4 sm:$0xff]   ;;  %v3439_v61 = vld [vmem:[%s4123_s4 + $0xd4] ss:$8 sps:$4 sm:$0xff]   ;;  %v3445_v62 = vld [vmem:[%s4123_s4 + $0xd0] ss:$8 sps:$4 sm:$0xff]  }
  0x25   : > { %1011 = vmatprep.subr.bf16.mxu1 %v3246_v25  ;;  %827 = vmatprep.mubr.bf16.mxu0 %v4140_v6  ;;  %v3452_v63 = vld [vmem:[%s4123_s4 + $0xe4] ss:$8 sps:$4 sm:$0xff]   ;;  %v3457_v0 = vld [vmem:[%s4123_s4 + $0xe0] ss:$8 sps:$4 sm:$0xff]   ;;  %v3464_v1 = vld [vmem:[%s4123_s4 + $0xf4] ss:$8 sps:$4 sm:$0xff]  }
  0x26   : > { %1041 = vmatprep.mubr.bf16.mxu1 %v4140_v6  ;;  %1262 = vmatpush1.bf16.msra.mxu0 %v3281_v32  ;;  %v3469_v2 = vld [vmem:[%s4123_s4 + $0xf0] ss:$8 sps:$4 sm:$0xff]   ;;  %v3488_v24 = vshrl.u32 %v849_v13, 7  ;;  %v732_v41 = vld [vmem:[%s4126_s7] sm:$0x3] }
  0x27   : > { %1263 = vmatprep.subr.bf16.mxu0 %v3301_v35  ;;  %4236 = vst [vmem:[#allocation10_spill] sm:$0xff] %v3469_v2 }
  0x28   : > { %1012 = vmatpush1.bf16.msra.mxu1 %v3265_v28  ;;  %v4150_v40 = vsub.s32 0, %v3488_v24 }
  0x29   : > { %1013 = vmatprep.subr.bf16.mxu1 %v3270_v29 }
  0x2a   : > { %1264 = vmatpush1.bf16.msra.mxu0 %v3307_v37  ;;  %v852_v13 = vrot.slane %v732_v41, %v4150_v40 }
  0x2b   : > { %1265 = vmatprep.subr.bf16.mxu0 %v3313_v38 }
  0x2c   : > { %1014 = vmatpush1.bf16.msra.mxu1 %v3286_v33  ;;  %2556 = vmatmul.mubr.msk.bf16.gmra.mrb[8].mxu0 %vm755_vm1, %v748_v36 }
  0x2d   : > { %1015 = vmatprep.subr.bf16.mxu1 %v3291_v34  ;;  %837 = vmatprep.mubr.bf16.mxu0 %v4140_v6 }
  0x2e   : > { %1266 = vmatpush1.bf16.msra.mxu0 %v3328_v42 }
  0x2f   : > { %1267 = vmatprep.subr.bf16.mxu0 %v3335_v43 }
  0x30   : > { %1016 = vmatpush1.bf16.msra.mxu1 %v3318_v39 }
  0x32   : > { %1268 = vmatpush1.bf16.msra.mxu0 %v3345_v46 }
  0x33   : > { %2572 = vmatmul.mubr.msk.bf16.vlgmr.msra.gmra.mrb[8].mxu1 %vm1005_vm3, %v3338_v44  ;;  %1269 = vmatprep.subr.bf16.mxu0 %v3350_v47 }
  0x34   : > { %2557 = vmatmul.mubr.msk.bf16.gmra.mrb[12].mxu0 %vm755_vm1, %v749_v45  ;;  %v4153_v45 = vsub.s32 1, %v3488_v24 }
  0x36   : > { %1270 = vmatpush1.bf16.msra.mxu0 %v3360_v48 }
  0x37   : > { %1271 = vmatprep.subr.bf16.mxu0 %v3365_v49 }
  0x3a   : > { %1272 = vmatpush1.bf16.msra.mxu0 %v3372_v50 }
  0x3b   : > { %1273 = vmatprep.subr.bf16.mxu0 %v3380_v51 }
  0x3e   : > { %1274 = vmatpush1.bf16.msra.mxu0 %v3385_v52 }
  0x3f   : > { %1275 = vmatprep.subr.bf16.mxu0 %v3391_v53 }
  0x42   : > { %1276 = vmatpush1.bf16.msra.mxu0 %v3397_v54 }
  0x43   : > { %1277 = vmatprep.subr.bf16.mxu0 %v3404_v55 }
  0x46   : > { %1278 = vmatpush1.bf16.msra.mxu0 %v3409_v56 }
  0x47   : > { %1279 = vmatprep.subr.bf16.mxu0 %v3415_v57 }
  0x4a   : > { %1280 = vmatpush1.bf16.msra.mxu0 %v3421_v58 }
  0x4b   : > { %1281 = vmatprep.subr.bf16.mxu0 %v3427_v59 }
  0x4e   : > { %1282 = vmatpush1.bf16.msra.mxu0 %v3433_v60 }
  0x4f   : > { %1283 = vmatprep.subr.bf16.mxu0 %v3439_v61 }
  0x52   : > { %1284 = vmatpush1.bf16.msra.mxu0 %v3445_v62 }
  0x53   : > { %1285 = vmatprep.subr.bf16.mxu0 %v3452_v63 }
  0x56   : > { %1286 = vmatpush1.bf16.msra.mxu0 %v3457_v0 }
  0x57   : > { %1287 = vmatprep.subr.bf16.mxu0 %v3464_v1 }
  0x5a   : > { %1288 = vmatpush1.bf16.msra.mxu0 %v3469_v2 }
  0x5b   : > { %2799 = vmatprep.subr.bf16.mxu0 %v4142_v10 }
  0xee   : > { %v907_v3 = vpop.f32.mrb[0].mxu1 }
  0xef   : > { %v909_v4 = vpop.f32.mrb[1].mxu1  ;;  %v3474_v5 = vpop.f32.mrb[0].mxu0  ;;  %v3511_v6 = vadd.f32 %v907_v3, %v852_v13 }
  0xf0   : > { %4237 = vst [vmem:[#allocation11_spill] sm:$0xff] %v3474_v5  ;;  %v911_v7 = vpop.f32.mrb[2].mxu1  ;;  %v3476_v8 = vpop.f32.mrb[1].mxu0 }
  0xf1   : > { %4238 = vst [vmem:[#allocation12_spill] sm:$0xff] %v3476_v8  ;;  %v912_v9 = vpop.f32.mrb[3].mxu1  ;;  %v3478_v11 = vpop.f32.mrb[2].mxu0  ;;  %4250 = vst [vmem:[#allocation24_spill] sm:$0xff] %v3511_v6 }
  0xf2   : > { %4239 = vst [vmem:[#allocation13_spill] sm:$0xff] %v3478_v11  ;;  %v3480_v12 = vpop.f32.mrb[3].mxu0 }
  0xf3   : > { %4240 = vst [vmem:[#allocation14_spill] sm:$0xff] %v3480_v12 }
  0xf6   : > { %v3482_v14 = vpop.f32.mrb[4].mxu1 }
  0xf7   : > { %4241 = vst [vmem:[#allocation15_spill] sm:$0xff] %v3482_v14  ;;  %v2785_v15 = vpop.f32.mrb[5].mxu1  ;;  %v3484_v17 = vpop.f32.mrb[4].mxu0 }
  0xf8   : > { %4242 = vst [vmem:[#allocation16_spill] sm:$0xff] %v3484_v17  ;;  %v961_v18 = vpop.f32.mrb[6].mxu1  ;;  %v3486_v19 = vpop.f32.mrb[5].mxu0 }
  0xf9   : > { %4243 = vst [vmem:[#allocation17_spill] sm:$0xff] %v3486_v19  ;;  %v2786_v30 = vpop.f32.mrb[7].mxu1  ;;  %v3490_v31 = vpop.f32.mrb[6].mxu0  ;;  %v856_v18 = vrot.slane %v732_v41, %v4153_v45 }
  0xfa   : > { %4244 = vst [vmem:[#allocation18_spill] sm:$0xff] %v3490_v31  ;;  %v3492_v36 = vpop.f32.mrb[7].mxu0 }
  0xfb   : > { %4245 = vst [vmem:[#allocation19_spill] sm:$0xff] %v3492_v36  ;;  %v3513_v10 = vadd.f32 %v909_v4, %v856_v18 }
  0xfd   : > { %4251 = vst [vmem:[#allocation25_spill] sm:$0xff] %v3513_v10 }
  0xff   : > { %v3499_v7 = vpop.f32.mrb[8].mxu0 }
 0x100   : > { %4246 = vst [vmem:[#allocation20_spill] sm:$0xff] %v3499_v7  ;;  %v3501_v9 = vpop.f32.mrb[9].mxu0 }
 0x101   : > { %4247 = vst [vmem:[#allocation21_spill] sm:$0xff] %v3501_v9  ;;  %v3505_v15 = vpop.f32.mrb[10].mxu0 }
 0x102   : > { %4248 = vst [vmem:[#allocation22_spill] sm:$0xff] %v3505_v15  ;;  %v3509_v30 = vpop.f32.mrb[11].mxu0 }
 0x103   : > { %4249 = vst [vmem:[#allocation23_spill] sm:$0xff] %v3509_v30 }
 0x106   : > { %v1043_v39 = vpop.f32.mrb[8].mxu1 }
 0x107   : > { %v1044_v34 = vadd.f32 %v1043_v39, %v3511_v6  ;;  %v1045_v33 = vpop.f32.mrb[9].mxu1  ;;  %v3516_v29 = vpop.f32.mrb[12].mxu0 }
 0x108   : > { %4252 = vst [vmem:[#allocation26_spill] sm:$0xff] %v3516_v29  ;;  %v1046_v28 = vadd.f32 %v1045_v33, %v3513_v10  ;;  %v1047_v40 = vpop.f32.mrb[10].mxu1  ;;  %v3519_v25 = vpop.f32.mrb[13].mxu0 }
 0x109   : > { %4253 = vst [vmem:[#allocation27_spill] sm:$0xff] %v3519_v25  ;;  %v1062_v23 = vadd.f32 %v1044_v34, %v3516_v29  ;;  %v1048_v41 = vpop.f32.mrb[11].mxu1  ;;  %v1050_v45 = vadd.f32 %v1044_v34, %v3474_v5  ;;  %v1052_v3 = vadd.f32 %v1044_v34, %v3478_v11  ;;  %v1054_v4 = vadd.f32 %v1044_v34, %v3484_v17  ;;  %v843_v13 = vpop.f32.mrb[14].mxu0 }
 0x10a   : > { %v1063_v39 = vadd.f32 %v1046_v28, %v3519_v25  ;;  %v1051_v18 = vadd.f32 %v1046_v28, %v3476_v8  ;;  %v1053_v6 = vadd.f32 %v1046_v28, %v3480_v12  ;;  %v1055_v33 = vadd.f32 %v1046_v28, %v3486_v19  ;;  %v844_v40 = vpop.f32.mrb[15].mxu0 }
 0x10b   : > { %v1064_v10 = vmax.f32 %v1050_v45, 0.0  ;;  %v1066_v14 = vmax.f32 %v1052_v3, 0.0  ;;  %v1057_v41 = vadd.f32 %v1046_v28, %v3492_v36  ;;  %v1056_v13 = vadd.f32 %v1044_v34, %v3490_v31 }
 0x10c   : > { %v1065_v29 = vmax.f32 %v1051_v18, 0.0  ;;  %v1067_v5 = vmax.f32 %v1053_v6, 0.0  ;;  %v1069_v16 = vmax.f32 %v1055_v33, 0.0  ;;  %v1068_v17 = vmax.f32 %v1054_v4, 0.0 }
 0x10d   : > { %v1078_v11 = vpack.c.bf16 %v1066_v14, %v1064_v10  ;;  %v1071_v2 = vmax.f32 %v1057_v41, 0.0  ;;  %v1059_v8 = vadd.f32 %v1046_v28, %v3501_v9  ;;  %v1061_v12 = vadd.f32 %v1046_v28, %v3509_v30  ;;  %v3588_v41 = vld [vmem:[%s4129_s10 + $0x60] sm:$0xff]  }
 0x10e   : > { %v1079_v25 = vpack.c.bf16 %v1067_v5, %v1065_v29  ;;  %v1058_v19 = vadd.f32 %v1044_v34, %v3499_v7  ;;  %v1070_v45 = vmax.f32 %v1056_v13, 0.0  ;;  %v1060_v3 = vadd.f32 %v1044_v34, %v3505_v15  ;;  %4262 = vst [vmem:[#allocation35_spill] sm:$0xff] %v3588_v41  ;;  %v3593_v13 = vld [vmem:[%s4129_s10 + $0x20] sm:$0xff]  }
 0x10f   : > { %v1081_v40 = vpack.c.bf16 %v1071_v2, %v1069_v16  ;;  %v1073_v18 = vmax.f32 %v1059_v8, 0.0  ;;  %v1075_v6 = vmax.f32 %v1061_v12, 0.0  ;;  %v1077_v5 = vmax.f32 %v1063_v39, 0.0  ;;  %v3545_v8 = vld [vmem:[%s4129_s10] sm:$0xff]   ;;  %v3564_v12 = vld [vmem:[%s4129_s10 + $0x50] sm:$0xff]   ;;  %v3581_v39 = vld [vmem:[%s4129_s10 + $0x18] sm:$0xff]  }
 0x110   : > { %1289 = vmatprep.mubr.bf16.mxu0 %v1079_v25  ;;  %v1072_v33 = vmax.f32 %v1058_v19, 0.0  ;;  %v1080_v10 = vpack.c.bf16 %v1070_v45, %v1068_v17  ;;  %v1074_v14 = vmax.f32 %v1060_v3, 0.0  ;;  %v1076_v16 = vmax.f32 %v1062_v23, 0.0  ;;  %v3540_v25 = vld [vmem:[%s4129_s10 + $0x40] sm:$0xff]   ;;  %4255 = vst [vmem:[#allocation28_spill] sm:$0xff] %v3545_v8  ;;  %v3551_v23 = vld [vmem:[%s4129_s10 + $0x48] sm:$0xff]  }
 0x111   : > { %1290 = vmatmul.mubr.bf16.vlgmr.msra.gmra.mrb[16].mxu0 %v1078_v11  ;;  %v1083_v4 = vpack.c.bf16 %v1075_v6, %v1073_v18  ;;  %v1085_v28 = vpack.c.bf16 %v1077_v5, %v1077_v5  ;;  %v4254_v34 = vmov 0.0   ;;  %2659 = vmatprep.subr.bf16.mxu1 %v3540_v25  ;;  %4256 = vst [vmem:[#allocation29_spill] sm:$0xff] %v3551_v23  ;;  %v3557_v11 = vld [vmem:[%s4129_s10 + $0x8] sm:$0xff]   ;;  %4258 = vst [vmem:[#allocation31_spill] sm:$0xff] %v3564_v12  ;;  %v3569_v17 = vld [vmem:[%s4129_s10 + $0x10] sm:$0xff]  }
 0x112   : > { %1299 = vmatprep.mubr.bf16.mxu0 %v1081_v40  ;;  %v1082_v29 = vpack.c.bf16 %v1074_v14, %v1072_v33  ;;  %v1084_v2 = vpack.c.bf16 %v1076_v16, %v1076_v16  ;;  %2660 = vmatpush3.bf16.msra.mxu1 %v3545_v8  ;;  %4257 = vst [vmem:[#allocation30_spill] sm:$0xff] %v3557_v11  ;;  %4259 = vst [vmem:[#allocation32_spill] sm:$0xff] %v3569_v17  ;;  %v3575_v19 = vld [vmem:[%s4129_s10 + $0x58] sm:$0xff]   ;;  %v3599_v40 = vld [vmem:[%s4129_s10 + $0x68] sm:$0xff]  }
 0x113   : > { %2661 = vmatprep.subr.bf16.mxu1 %v3551_v23  ;;  %4260 = vst [vmem:[#allocation33_spill] sm:$0xff] %v3575_v19  ;;  %4261 = vst [vmem:[#allocation34_spill] sm:$0xff] %v3581_v39  ;;  %v3605_v45 = vld [vmem:[%s4129_s10 + $0x28] sm:$0xff]   ;;  %v3612_v3 = vld [vmem:[%s4129_s10 + $0x70] sm:$0xff]  }
 0x114   : > { %4263 = vst [vmem:[#allocation36_spill] sm:$0xff] %v3593_v13  ;;  %4264 = vst [vmem:[#allocation37_spill] sm:$0xff] %v3599_v40  ;;  %v3617_v18 = vld [vmem:[%s4129_s10 + $0x30] sm:$0xff]   ;;  %v3623_v6 = vld [vmem:[%s4129_s10 + $0x78] sm:$0xff]  }
 0x115   : > { %4265 = vst [vmem:[#allocation38_spill] sm:$0xff] %v3605_v45  ;;  %4266 = vst [vmem:[#allocation39_spill] sm:$0xff] %v3612_v3  ;;  %v3629_v33 = vld [vmem:[%s4129_s10 + $0x38] sm:$0xff]   ;;  %v3643_v14 = vld [vmem:[%s4132_s13 + $0x8] sm:$0xff]  }
 0x116   : > { %2662 = vmatpush3.bf16.msra.mxu1 %v3557_v11  ;;  %4267 = vst [vmem:[#allocation40_spill] sm:$0xff] %v3617_v18  ;;  %4268 = vst [vmem:[#allocation41_spill] sm:$0xff] %v3623_v6 }
 0x117   : > { %2663 = vmatprep.subr.bf16.mxu1 %v3564_v12  ;;  %4269 = vst [vmem:[#allocation42_spill] sm:$0xff] %v3629_v33  ;;  %4271 = vst [vmem:[#allocation44_spill] sm:$0xff] %v3643_v14 }
 0x119   : > { %1300 = vmatmul.mubr.bf16.gmra.mrb[20].mxu0 %v1080_v10  ;;  %v3637_v10 = vld [vmem:[%s4132_s13] sm:$0xff]  }
 0x11a   : > { %1309 = vmatprep.mubr.bf16.mxu0 %v1083_v4  ;;  %2664 = vmatpush3.bf16.msra.mxu1 %v3569_v17  ;;  %4270 = vst [vmem:[#allocation43_spill] sm:$0xff] %v3637_v10  ;;  %v733_v4 = vld [vmem:[%s4127_s8] sm:$0x3] }
 0x11b   : > { %2665 = vmatprep.subr.bf16.mxu1 %v3575_v19  ;;  %2800 = vmatpush3.bf16.msra.mxu0 %v3637_v10 }
 0x11c   : > { %2801 = vmatprep.subr.bf16.mxu0 %v4254_v34 }
 0x11e   : > { %2666 = vmatpush3.bf16.msra.mxu1 %v3581_v39 }
 0x11f   : > { %2667 = vmatprep.subr.bf16.mxu1 %v3588_v41  ;;  %2802 = vmatpush3.bf16.msra.mxu0 %v3643_v14 }
 0x120   : > { %2803 = vmatprep.subr.bf16.mxu0 %v4254_v34 }
 0x121   : > { %1310 = vmatmul.mubr.bf16.gmra.mrb[24].mxu0 %v1082_v29  ;;  %v4272_v29 = vsub.s32 0, %v3488_v24 }
 0x122   : > { %1319 = vmatprep.mubr.bf16.mxu0 %v1085_v28  ;;  %2668 = vmatpush3.bf16.msra.mxu1 %v3593_v13  ;;  %v4273_v28 = vsub.s32 1, %v3488_v24 }
 0x123   : > { %2669 = vmatprep.subr.bf16.mxu1 %v3599_v40  ;;  %v3653_v5 = vrot.slane %v733_v4, %v4272_v29 }
 0x124   : > { %v3657_v16 = vrot.slane %v733_v4, %v4273_v28 }
 0x126   : > { %2670 = vmatpush3.bf16.msra.mxu1 %v3605_v45 }
 0x127   : > { %2671 = vmatprep.subr.bf16.mxu1 %v3612_v3 }
 0x129   : > { %1320 = vmatmul.mubr.bf16.gmra.mrb[28].mxu0 %v1084_v2 }
 0x12a   : > { %2815 = vmatprep.mubr.msk.bf16.mxu0 %vm3069_vm2, %v4254_v34  ;;  %2672 = vmatpush3.bf16.msra.mxu1 %v3617_v18 }
 0x12b   : > { %2673 = vmatprep.subr.bf16.mxu1 %v3623_v6 }
 0x12e   : > { %2674 = vmatpush3.bf16.msra.mxu1 %v3629_v33 }
 0x12f   : > { %2787 = vmatprep.subr.bf16.mxu1 %v4254_v34 }
 0x1e4   : > { %v1291_v2 = vpop.f32.mrb[16].mxu0 }
 0x1e5   : > { %v1292_v10 = vadd.f32 %v1291_v2, %v3653_v5  ;;  %v1293_v15 = vpop.f32.mrb[17].mxu0 }
 0x1e6   : > { %v1294_v14 = vadd.f32 %v1293_v15, %v3657_v16  ;;  %v1295_v7 = vpop.f32.mrb[18].mxu0 }
 0x1e7   : > { %v1296_v30 = vadd.f32 %v1295_v7, %v3653_v5  ;;  %v1297_v9 = vpop.f32.mrb[19].mxu0  ;;  %v1328_v31 = vmax.f32 %v1292_v10, 0.0 }
 0x1e8   : > { %v1298_v36 = vadd.f32 %v1297_v9, %v3657_v16  ;;  %v1329_v29 = vmax.f32 %v1294_v14, 0.0 }
 0x1e9   : > { %v1330_v33 = vmax.f32 %v1296_v30, 0.0 }
 0x1ea   : > { %v1331_v6 = vmax.f32 %v1298_v36, 0.0 }
 0x1eb   : > { %v1342_v18 = vadd.f32 %v1330_v33, %v1328_v31 }
 0x1ec   : > { %v1348_v24 = vadd.f32 %v1331_v6, %v1329_v29  ;;  %v1301_v4 = vpop.f32.mrb[20].mxu0 }
 0x1ed   : > { %v1302_v28 = vadd.f32 %v1301_v4, %v3653_v5  ;;  %v1303_v3 = vpop.f32.mrb[21].mxu0 }
 0x1ee   : > { %v1304_v2 = vadd.f32 %v1303_v3, %v3657_v16  ;;  %v1305_v45 = vpop.f32.mrb[22].mxu0 }
 0x1ef   : > { %v1332_v15 = vmax.f32 %v1302_v28, 0.0  ;;  %v1306_v40 = vadd.f32 %v1305_v45, %v3653_v5  ;;  %v1307_v7 = vpop.f32.mrb[23].mxu0 }
 0x1f0   : > { %v1333_v13 = vmax.f32 %v1304_v2, 0.0  ;;  %v1308_v9 = vadd.f32 %v1307_v7, %v3657_v16 }
 0x1f1   : > { %v1343_v10 = vadd.f32 %v1342_v18, %v1332_v15  ;;  %v1334_v30 = vmax.f32 %v1306_v40, 0.0 }
 0x1f2   : > { %v1349_v14 = vadd.f32 %v1348_v24, %v1333_v13  ;;  %v1335_v36 = vmax.f32 %v1308_v9, 0.0 }
 0x1f3   : > { %v1344_v31 = vadd.f32 %v1343_v10, %v1334_v30 }
 0x1f4   : > { %v1350_v6 = vadd.f32 %v1349_v14, %v1335_v36  ;;  %v1311_v33 = vpop.f32.mrb[24].mxu0 }
 0x1f5   : > { %v1312_v29 = vadd.f32 %v1311_v33, %v3653_v5  ;;  %v1313_v4 = vpop.f32.mrb[25].mxu0 }
 0x1f6   : > { %v1314_v3 = vadd.f32 %v1313_v4, %v3657_v16  ;;  %v1315_v41 = vpop.f32.mrb[26].mxu0 }
 0x1f7   : > { %v1336_v28 = vmax.f32 %v1312_v29, 0.0  ;;  %v1316_v45 = vadd.f32 %v1315_v41, %v3653_v5  ;;  %v1317_v39 = vpop.f32.mrb[27].mxu0 }
 0x1f8   : > { %v1337_v2 = vmax.f32 %v1314_v3, 0.0  ;;  %v1318_v7 = vadd.f32 %v1317_v39, %v3657_v16  ;;  %v3676_v39 = vld [vmem:[%s4128_s9] sm:$0xff]  }
 0x1f9   : > { %v1345_v18 = vadd.f32 %v1344_v31, %v1336_v28  ;;  %v1338_v40 = vmax.f32 %v1316_v45, 0.0 }
 0x1fa   : > { %v1351_v13 = vadd.f32 %v1350_v6, %v1337_v2  ;;  %v1339_v24 = vmax.f32 %v1318_v7, 0.0  ;;  %v3682_v6 = vld [vmem:[%s4128_s9 + $0x8] sm:$0xff]  }
 0x1fb   : > { %v1346_v15 = vadd.f32 %v1345_v18, %v1338_v40 }
 0x1fc   : > { %v1352_v9 = vadd.f32 %v1351_v13, %v1339_v24  ;;  %v1321_v10 = vpop.f32.mrb[28].mxu0  ;;  %v4277_v24 = vld [vmem:[#allocation3_spill] sm:$0xff] }
 0x1fd   : > { %v1322_v30 = vadd.f32 %v1321_v10, %v3653_v5  ;;  %v1323_v14 = vpop.f32.mrb[29].mxu0  ;;  %v4280_v10 = vld [vmem:[#allocation5_spill] sm:$0xff] }
 0x1fe   : > { %v1324_v36 = vadd.f32 %v1323_v14, %v3657_v16  ;;  %v1325_v33 = vpop.f32.mrb[30].mxu0  ;;  %v4282_v14 = vld [vmem:[#allocation7_spill] sm:$0xff] }
 0x1ff   : > { %v1340_v29 = vmax.f32 %v1322_v30, 0.0  ;;  %v1326_v4 = vpop.f32.mrb[31].mxu0  ;;  %v4281_v30 = vld [vmem:[#allocation6_spill] sm:$0xff]  ;;  %v4284_v33 = vld [vmem:[#allocation9_spill] sm:$0xff] }
 0x200   : > { %v1341_v41 = vmax.f32 %v1324_v36, 0.0  ;;  %v4283_v36 = vld [vmem:[#allocation8_spill] sm:$0xff] }
 0x201   : > { %v1347_v19 = vadd.f32 %v1346_v15, %v1340_v29  ;;  %v4278_v15 = vmov 0   ;;  %v3798_v29 = vld [vmem:[%s4133_s14] ss:$0 sm:$0xff] }
 0x202   : > { %v1353_v3 = vadd.f32 %v1352_v9, %v1341_v41  ;;  %v4279_v9 = vld [vmem:[#allocation4_spill] sm:$0xff] }
 0x203   : > { %v1354_v31 = vpack.c.bf16 %v1347_v19, %v1347_v19  ;;  %v3691_v19 = vld [vmem:[%s4128_s9 + $0x10] sm:$0xff]  }
 0x204   : > { %v1355_v17 = vpack.c.bf16 %v1353_v3, %v1353_v3 }
 0x206   : > { %1484 = vmatprep.mubr.bf16.mxu1 %v1355_v17  ;;  %v3698_v17 = vld [vmem:[%s4128_s9 + $0x18] sm:$0xff]  }
 0x207   : > { %1485 = vmatmul.mubr.bf16.vlgmr.msra.gmra.mrb[12].mxu1 %v1354_v31 }
 0x208   : > { %2788 = vmatpush3.bf16.msra.mxu1 %v3676_v39  ;;  %2795 = vmatprep.mubr.msk.bf16.mxu1 %vm3069_vm2, %v4254_v34 }
 0x209   : > { %2789 = vmatprep.subr.bf16.mxu1 %v4254_v34 }
 0x20c   : > { %2790 = vmatpush3.bf16.msra.mxu1 %v3682_v6 }
 0x20d   : > { %2791 = vmatprep.subr.bf16.mxu1 %v4254_v34 }
 0x210   : > { %2792 = vmatpush3.bf16.msra.mxu1 %v3691_v19 }
 0x211   : > { %2793 = vmatprep.subr.bf16.mxu1 %v4254_v34 }
 0x214   : > { %2794 = vmatpush3.bf16.msra.mxu1 %v3698_v17 }
 0x215   : > { %1735 = vmatprep.subr.bf16.mxu1 %v3228_v21  ;;  %v4275_v21 = vld [vmem:[#allocation2_spill] sm:$0xff] }
 0x217   : > { %2796 = vmatmul.mubr.msk.bf16.vlgmr.msra.gmra.mrb[16].mxu1 %vm1005_vm3, %v3338_v44 }
 0x218   : > { %1736 = vmatpush1.bf16.msra.mxu1 %v3223_v20  ;;  %v4274_v20 = vld [vmem:[#allocation10_spill] sm:$0xff] }
 0x219   : > { %1737 = vmatprep.subr.bf16.mxu1 %v3235_v22  ;;  %v3740_v22 = vld [vmem:[%s4132_s13 + $0x10] sm:$0xff]   ;;  %4285 = vst [vmem:[#allocation10_spill] sm:$0xff] %v3798_v29 }
 0x21a   : > { %2804 = vmatpush3.bf16.msra.mxu0 %v3740_v22 }
 0x21b   : > { %2805 = vmatprep.subr.bf16.mxu0 %v4254_v34 }
 0x21c   : > { %1738 = vmatpush1.bf16.msra.mxu1 %v3252_v26  ;;  %v3747_v26 = vld [vmem:[%s4132_s13 + $0x18] sm:$0xff]  }
 0x21d   : > { %1739 = vmatprep.subr.bf16.mxu1 %v3258_v27  ;;  %v3753_v27 = vld [vmem:[%s4132_s13 + $0x20] sm:$0xff]  }
 0x21e   : > { %2806 = vmatpush3.bf16.msra.mxu0 %v3747_v26 }
 0x21f   : > { %2807 = vmatprep.subr.bf16.mxu0 %v4254_v34 }
 0x220   : > { %1740 = vmatpush1.bf16.msra.mxu1 %v3281_v32  ;;  %v3760_v32 = vld [vmem:[%s4132_s13 + $0x28] sm:$0xff]  }
 0x221   : > { %1741 = vmatprep.subr.bf16.mxu1 %v3301_v35  ;;  %v3768_v35 = vld [vmem:[%s4132_s13 + $0x30] sm:$0xff]  }
 0x222   : > { %2808 = vmatpush3.bf16.msra.mxu0 %v3753_v27 }
 0x223   : > { %2809 = vmatprep.subr.bf16.mxu0 %v4254_v34 }
 0x224   : > { %1742 = vmatpush1.bf16.msra.mxu1 %v3307_v37  ;;  %v3774_v37 = vld [vmem:[%s4132_s13 + $0x38] sm:$0xff]  }
 0x225   : > { %1743 = vmatprep.subr.bf16.mxu1 %v3313_v38 }
 0x226   : > { %2810 = vmatpush3.bf16.msra.mxu0 %v3760_v32 }
 0x227   : > { %2811 = vmatprep.subr.bf16.mxu0 %v4254_v34 }
 0x228   : > { %1744 = vmatpush1.bf16.msra.mxu1 %v3328_v42 }
 0x229   : > { %1745 = vmatprep.subr.bf16.mxu1 %v3335_v43 }
 0x22a   : > { %2812 = vmatpush3.bf16.msra.mxu0 %v3768_v35 }
 0x22b   : > { %2813 = vmatprep.subr.bf16.mxu0 %v4254_v34 }
 0x22c   : > { %1746 = vmatpush1.bf16.msra.mxu1 %v3345_v46 }
 0x22d   : > { %1747 = vmatprep.subr.bf16.mxu1 %v3350_v47  ;;  %v2562_v47 = vld [vmem:[%s4131_s12] ss:$0 sm:$0xff] }
 0x22e   : > { %2814 = vmatpush3.bf16.msra.mxu0 %v3774_v37 }
 0x22f   : > { %1658 = vmatprep.subr.bf16.mxu0 %v4275_v21 }
 0x230   : > { %1748 = vmatpush1.bf16.msra.mxu1 %v3360_v48 }
 0x231   : > { %1749 = vmatprep.subr.bf16.mxu1 %v3365_v49  ;;  %v4276_v49 = vld [vmem:[#allocation15_spill] sm:$0xff] }
 0x234   : > { %1750 = vmatpush1.bf16.msra.mxu1 %v3372_v50  ;;  %v3783_v50 = vadd.f32 %v2562_v47, %v4276_v49  ;;  %v4289_v47 = vld [vmem:[#allocation35_spill] sm:$0xff]  ;;  %v4291_v49 = vld [vmem:[#allocation37_spill] sm:$0xff] }
 0x235   : > { %1751 = vmatprep.subr.bf16.mxu1 %v3380_v51 }
 0x238   : > { %1752 = vmatpush1.bf16.msra.mxu1 %v3385_v52 }
 0x239   : > { %1753 = vmatprep.subr.bf16.mxu1 %v3391_v53 }
 0x23c   : > { %1754 = vmatpush1.bf16.msra.mxu1 %v3397_v54 }
 0x23d   : > { %1755 = vmatprep.subr.bf16.mxu1 %v3404_v55 }
 0x240   : > { %1756 = vmatpush1.bf16.msra.mxu1 %v3409_v56 }
 0x241   : > { %1757 = vmatprep.subr.bf16.mxu1 %v3415_v57 }
 0x244   : > { %1758 = vmatpush1.bf16.msra.mxu1 %v3421_v58 }
 0x245   : > { %1759 = vmatprep.subr.bf16.mxu1 %v3427_v59 }
 0x248   : > { %1760 = vmatpush1.bf16.msra.mxu1 %v3433_v60 }
 0x249   : > { %1761 = vmatprep.subr.bf16.mxu1 %v3439_v61 }
 0x24c   : > { %1762 = vmatpush1.bf16.msra.mxu1 %v3445_v62 }
 0x24d   : > { %1763 = vmatprep.subr.bf16.mxu1 %v3452_v63 }
 0x250   : > { %1764 = vmatpush1.bf16.msra.mxu1 %v3457_v0 }
 0x251   : > { %1765 = vmatprep.subr.bf16.mxu1 %v3464_v1 }
 0x254   : > { %1766 = vmatpush1.bf16.msra.mxu1 %v4274_v20 }
 0x255   : > { %1962 = vmatprep.subr.bf16.mxu1 %v4275_v21 }
 0x2da   : > { %v2675_v38 = vpop.f32.mrb[12].mxu1 }
 0x2db   : > { %v2676_v42 = vpop.f32.mrb[13].mxu1 }
 0x2dc   : > { %v2677_v43 = vadd.f32 %v2676_v42, %v2675_v38  ;;  %v2678_v44 = vpop.f32.mrb[14].mxu1 }
 0x2dd   : > { %v2679_v46 = vpop.f32.mrb[15].mxu1  ;;  %v4287_v44 = vld [vmem:[#allocation33_spill] sm:$0xff] }
 0x2de   : > { %v4288_v46 = vld [vmem:[#allocation34_spill] sm:$0xff] }
 0x2ea   : > { %v1550_v48 = vpop.f32.mrb[16].mxu1 }
 0x2eb   : > { %v1551_v28 = vadd.f32 %v2677_v43, %v1550_v48  ;;  %v2797_v45 = vpop.f32.mrb[17].mxu1  ;;  %v4286_v43 = vld [vmem:[#allocation32_spill] sm:$0xff] }
 0x2ec   : > { %v1553_v2 = vpop.f32.mrb[18].mxu1  ;;  %v4290_v48 = vld [vmem:[#allocation36_spill] sm:$0xff]  ;;  %v4293_v45 = vld [vmem:[#allocation39_spill] sm:$0xff] }
 0x2ed   : > { %v1556_v7 = vadd.f32 %v1551_v28, %v3783_v50  ;;  %v2798_v18 = vpop.f32.mrb[19].mxu1  ;;  %v4292_v28 = vld [vmem:[#allocation38_spill] sm:$0xff]  ;;  %v4294_v2 = vld [vmem:[#allocation40_spill] sm:$0xff] }
 0x2ee   : > { %v4296_v18 = vld [vmem:[#allocation42_spill] sm:$0xff] }
 0x2ef   : > { %v1557_v40 = vmax.f32 %v1556_v7, 0.0  ;;  %v4295_v7 = vld [vmem:[#allocation41_spill] sm:$0xff] }
 0x2f1   : > { %v1558_v13 = vpack.c.bf16 %v1557_v40, %v1557_v40 }
 0x2f3   : > { %2816 = vmatmul.mubr.bf16.vlgmr.msra.gmra.mrb[32].mxu0 %v1558_v13  ;;  %v4297_v13 = vld [vmem:[#allocation24_spill] sm:$0xff] }
 0x2f4   : > { %1659 = vmatpush1.bf16.msra.mxu0 %v4277_v24  ;;  %1690 = vmatprep.mubr.bf16.mxu0 %v4278_v15 }
 0x2f5   : > { %1660 = vmatprep.subr.bf16.mxu0 %v4279_v9 }
 0x2f8   : > { %1661 = vmatpush1.bf16.msra.mxu0 %v4280_v10  ;;  %v4298_v10 = vld [vmem:[#allocation25_spill] sm:$0xff] }
 0x2f9   : > { %1662 = vmatprep.subr.bf16.mxu0 %v4281_v30 }
 0x2fc   : > { %1663 = vmatpush1.bf16.msra.mxu0 %v4282_v14 }
 0x2fd   : > { %1664 = vmatprep.subr.bf16.mxu0 %v4283_v36 }
 0x300   : > { %1665 = vmatpush1.bf16.msra.mxu0 %v4284_v33 }
 0x301   : > { %2695 = vmatprep.subr.bf16.mxu0 %v3540_v25 }
 0x3c6   : > { %v1647_v4 = vpop.f32.mrb[32].mxu0 }
 0x3c7   : > { %v1648_v41 = vadd.f32 %v3798_v29, %v1647_v4  ;;  %v2817_v3 = vpop.f32.mrb[33].mxu0  ;;  %v4299_v4 = vld [vmem:[#allocation11_spill] sm:$0xff]  ;;  %v4310_v29 = vld [vmem:[#allocation22_spill] sm:$0xff] }
 0x3c8   : > { %v1650_v31 = vpop.f32.mrb[34].mxu0  ;;  %v4300_v3 = vld [vmem:[#allocation13_spill] sm:$0xff] }
 0x3c9   : > { %v1653_v21 = vmax.f32 %v1648_v41, 0.0  ;;  %v2818_v38 = vpop.f32.mrb[35].mxu0 }
 0x3cb   : > { %v3801_v42 = vpack.c.bf16 %v1653_v21, %v1653_v21  ;;  %v4301_v21 = vld [vmem:[#allocation16_spill] sm:$0xff] }
 0x3cd   : > { %2635 = vmatmul.mubr.msk.bf16.vlgmr.msra.gmra.mrb[36].mxu0 %vm1005_vm3, %v3801_v42 }
 0x3ce   : > { %2696 = vmatpush3.bf16.msra.mxu0 %v3545_v8  ;;  %v4309_v8 = vld [vmem:[#allocation20_spill] sm:$0xff] }
 0x3cf   : > { %2697 = vmatprep.subr.bf16.mxu0 %v3551_v23 }
 0x3d2   : > { %2698 = vmatpush3.bf16.msra.mxu0 %v3557_v11  ;;  %v4308_v11 = vld [vmem:[#allocation23_spill] sm:$0xff] }
 0x3d3   : > { %2699 = vmatprep.subr.bf16.mxu0 %v3564_v12  ;;  %v4307_v12 = vld [vmem:[#allocation21_spill] sm:$0xff] }
 0x3d6   : > { %2700 = vmatpush3.bf16.msra.mxu0 %v4286_v43 }
 0x3d7   : > { %2701 = vmatprep.subr.bf16.mxu0 %v4287_v44 }
 0x3da   : > { %2702 = vmatpush3.bf16.msra.mxu0 %v4288_v46 }
 0x3db   : > { %2703 = vmatprep.subr.bf16.mxu0 %v4289_v47 }
 0x3de   : > { %2704 = vmatpush3.bf16.msra.mxu0 %v4290_v48  ;;  %v4305_v48 = vld [vmem:[#allocation17_spill] sm:$0xff] }
 0x3df   : > { %2705 = vmatprep.subr.bf16.mxu0 %v4291_v49 }
 0x3e2   : > { %2706 = vmatpush3.bf16.msra.mxu0 %v4292_v28  ;;  %v4304_v28 = vld [vmem:[#allocation14_spill] sm:$0xff] }
 0x3e3   : > { %2707 = vmatprep.subr.bf16.mxu0 %v4293_v45  ;;  %v4303_v45 = vld [vmem:[#allocation12_spill] sm:$0xff] }
 0x3e6   : > { %2708 = vmatpush3.bf16.msra.mxu0 %v4294_v2  ;;  %v4302_v2 = vld [vmem:[#allocation18_spill] sm:$0xff] }
 0x3e7   : > { %2709 = vmatprep.subr.bf16.mxu0 %v4295_v7 }
 0x3ea   : > { %2710 = vmatpush3.bf16.msra.mxu0 %v4296_v18 }
 0x3eb   : > { %2819 = vmatprep.subr.bf16.mxu0 %v4254_v34 }
 0x4a0   : > { %v1692_v40 = vpop.f32.mrb[36].mxu0 }
 0x4a1   : > { %v1693_v24 = vadd.f32 %v1692_v40, %v4297_v13  ;;  %v1694_v9 = vpop.f32.mrb[37].mxu0  ;;  %v4306_v40 = vld [vmem:[#allocation19_spill] sm:$0xff] }
 0x4a2   : > { %v1695_v30 = vadd.f32 %v1694_v9, %v4298_v10  ;;  %v1696_v14 = vpop.f32.mrb[38].mxu0 }
 0x4a3   : > { %v1697_v36 = vpop.f32.mrb[39].mxu0  ;;  %v1699_v41 = vadd.f32 %v1693_v24, %v4299_v4  ;;  %v1701_v31 = vadd.f32 %v1693_v24, %v4300_v3  ;;  %v1703_v38 = vadd.f32 %v1693_v24, %v4301_v21  ;;  %v1705_v7 = vadd.f32 %v1693_v24, %v4302_v2 }
 0x4a4   : > { %v1700_v18 = vadd.f32 %v1695_v30, %v4303_v45  ;;  %v1702_v49 = vadd.f32 %v1695_v30, %v4304_v28  ;;  %v1704_v47 = vadd.f32 %v1695_v30, %v4305_v48  ;;  %v1706_v13 = vadd.f32 %v1695_v30, %v4306_v40 }
 0x4a5   : > { %v1713_v46 = vmax.f32 %v1699_v41, 0.0  ;;  %v1715_v9 = vmax.f32 %v1701_v31, 0.0  ;;  %v1717_v14 = vmax.f32 %v1703_v38, 0.0  ;;  %v1719_v36 = vmax.f32 %v1705_v7, 0.0  ;;  %v4311_v38 = vld [vmem:[#allocation27_spill] sm:$0xff] }
 0x4a6   : > { %v1714_v10 = vmax.f32 %v1700_v18, 0.0  ;;  %v1716_v4 = vmax.f32 %v1702_v49, 0.0  ;;  %v1718_v44 = vmax.f32 %v1704_v47, 0.0  ;;  %v1720_v3 = vmax.f32 %v1706_v13, 0.0  ;;  %v4312_v18 = vld [vmem:[#allocation26_spill] sm:$0xff] }
 0x4a7   : > { %v1727_v43 = vpack.c.bf16 %v1715_v9, %v1713_v46  ;;  %v1729_v21 = vpack.c.bf16 %v1719_v36, %v1717_v14  ;;  %v1708_v2 = vadd.f32 %v1695_v30, %v4307_v12  ;;  %v1710_v45 = vadd.f32 %v1695_v30, %v4308_v11 }
 0x4a8   : > { %v1728_v23 = vpack.c.bf16 %v1716_v4, %v1714_v10  ;;  %v1730_v28 = vpack.c.bf16 %v1720_v3, %v1718_v44  ;;  %v1707_v48 = vadd.f32 %v1693_v24, %v4309_v8  ;;  %v1709_v40 = vadd.f32 %v1693_v24, %v4310_v29  ;;  %v3035_v44 = vld [vmem:[%s4226_s24] ss:$8 sps:$4 sm:$0xff]  }
 0x4a9   : > { %v1722_v41 = vmax.f32 %v1708_v2, 0.0  ;;  %v1724_v31 = vmax.f32 %v1710_v45, 0.0  ;;  %v1712_v7 = vadd.f32 %v1695_v30, %v4311_v38  ;;  %v1711_v49 = vadd.f32 %v1693_v24, %v4312_v18  ;;  %v3036_v45 = vld [vmem:[%s4226_s24 + $0x14] ss:$8 sps:$4 sm:$0xff]  }
 0x4aa   : > { %1767 = vmatprep.mubr.bf16.mxu1 %v1728_v23  ;;  %v1721_v47 = vmax.f32 %v1707_v48, 0.0  ;;  %v1723_v46 = vmax.f32 %v1709_v40, 0.0  ;;  %v3037_v23 = vld [vmem:[%s4226_s24 + $0x10] ss:$8 sps:$4 sm:$0xff]   ;;  %v3039_v48 = vld [vmem:[%s4226_s24 + $0x20] ss:$8 sps:$4 sm:$0xff]  }
 0x4ab   : > { %1768 = vmatmul.mubr.bf16.vlgmr.msra.gmra.mrb[20].mxu1 %v1727_v43  ;;  %v1732_v13 = vpack.c.bf16 %v1724_v31, %v1722_v41  ;;  %v3038_v43 = vld [vmem:[%s4226_s24 + $0x24] ss:$8 sps:$4 sm:$0xff]   ;;  %v1726_v2 = vmax.f32 %v1712_v7, 0.0  ;;  %v1725_v10 = vmax.f32 %v1711_v49, 0.0 }
 0x4ac   : > { %1777 = vmatprep.mubr.bf16.mxu1 %v1730_v28  ;;  %v1731_v9 = vpack.c.bf16 %v1723_v46, %v1721_v47  ;;  %1963 = vmatpush1.bf16.msra.mxu1 %v3035_v44  ;;  %v3040_v28 = vld [vmem:[%s4226_s24 + $0x34] ss:$8 sps:$4 sm:$0xff]  }
 0x4ad   : > { %1964 = vmatprep.subr.bf16.mxu1 %v3036_v45  ;;  %v1734_v24 = vpack.c.bf16 %v1726_v2, %v1726_v2  ;;  %v1733_v30 = vpack.c.bf16 %v1725_v10, %v1725_v10 }
 0x4b0   : > { %1965 = vmatpush1.bf16.msra.mxu1 %v3037_v23 }
 0x4b1   : > { %1966 = vmatprep.subr.bf16.mxu1 %v3038_v43 }
 0x4b3   : > { %1778 = vmatmul.mubr.bf16.gmra.mrb[24].mxu1 %v1729_v21 }
 0x4b4   : > { %1787 = vmatprep.mubr.bf16.mxu1 %v1732_v13  ;;  %1967 = vmatpush1.bf16.msra.mxu1 %v3039_v48 }
 0x4b5   : > { %1968 = vmatprep.subr.bf16.mxu1 %v3040_v28 }
 0x4b8   : > { %1969 = vmatpush1.bf16.msra.mxu1 %v4284_v33 }
 0x4b9   : > { %2731 = vmatprep.subr.bf16.mxu1 %v3540_v25 }
 0x4bb   : > { %1788 = vmatmul.mubr.bf16.gmra.mrb[28].mxu1 %v1731_v9 }
 0x4bc   : > { %1797 = vmatprep.mubr.bf16.mxu1 %v1734_v24 }
 0x4c3   : > { %1798 = vmatmul.mubr.bf16.gmra.mrb[32].mxu1 %v1733_v30 }
 0x4c4   : > { %1994 = vmatprep.mubr.bf16.mxu1 %v4278_v15 }
 0x57e   : > { %v1769_v4 = vpop.f32.mrb[20].mxu1 }
 0x57f   : > { %v1770_v3 = vadd.f32 %v1769_v4, %v3653_v5  ;;  %v1771_v21 = vpop.f32.mrb[21].mxu1 }
 0x580   : > { %v1772_v40 = vadd.f32 %v1771_v21, %v3657_v16  ;;  %v1773_v14 = vpop.f32.mrb[22].mxu1 }
 0x581   : > { %v1774_v36 = vadd.f32 %v1773_v14, %v3653_v5  ;;  %v1775_v33 = vpop.f32.mrb[23].mxu1  ;;  %v1806_v41 = vmax.f32 %v1770_v3, 0.0 }
 0x582   : > { %v1776_v25 = vadd.f32 %v1775_v33, %v3657_v16  ;;  %v1807_v7 = vmax.f32 %v1772_v40, 0.0 }
 0x583   : > { %v1808_v31 = vmax.f32 %v1774_v36, 0.0 }
 0x584   : > { %v1809_v49 = vmax.f32 %v1776_v25, 0.0 }
 0x585   : > { %v1820_v47 = vadd.f32 %v1808_v31, %v1806_v41 }
 0x586   : > { %v1826_v46 = vadd.f32 %v1809_v49, %v1807_v7  ;;  %v1779_v13 = vpop.f32.mrb[24].mxu1 }
 0x587   : > { %v1780_v15 = vadd.f32 %v1779_v13, %v3653_v5  ;;  %v1781_v9 = vpop.f32.mrb[25].mxu1 }
 0x588   : > { %v1782_v44 = vadd.f32 %v1781_v9, %v3657_v16  ;;  %v1783_v45 = vpop.f32.mrb[26].mxu1 }
 0x589   : > { %v1810_v23 = vmax.f32 %v1780_v15, 0.0  ;;  %v1784_v43 = vadd.f32 %v1783_v45, %v3653_v5  ;;  %v1785_v48 = vpop.f32.mrb[27].mxu1 }
 0x58a   : > { %v1811_v28 = vmax.f32 %v1782_v44, 0.0  ;;  %v1786_v2 = vadd.f32 %v1785_v48, %v3657_v16 }
 0x58b   : > { %v1821_v24 = vadd.f32 %v1820_v47, %v1810_v23  ;;  %v1812_v10 = vmax.f32 %v1784_v43, 0.0 }
 0x58c   : > { %v1827_v30 = vadd.f32 %v1826_v46, %v1811_v28  ;;  %v1813_v4 = vmax.f32 %v1786_v2, 0.0 }
 0x58d   : > { %v1822_v3 = vadd.f32 %v1821_v24, %v1812_v10 }
 0x58e   : > { %v1828_v21 = vadd.f32 %v1827_v30, %v1813_v4  ;;  %v1789_v40 = vpop.f32.mrb[28].mxu1 }
 0x58f   : > { %v1790_v14 = vadd.f32 %v1789_v40, %v3653_v5  ;;  %v1791_v36 = vpop.f32.mrb[29].mxu1 }
 0x590   : > { %v1792_v33 = vadd.f32 %v1791_v36, %v3657_v16  ;;  %v1793_v25 = vpop.f32.mrb[30].mxu1 }
 0x591   : > { %v1814_v41 = vmax.f32 %v1790_v14, 0.0  ;;  %v1794_v31 = vadd.f32 %v1793_v25, %v3653_v5  ;;  %v1795_v7 = vpop.f32.mrb[31].mxu1 }
 0x592   : > { %v1815_v49 = vmax.f32 %v1792_v33, 0.0  ;;  %v1796_v13 = vadd.f32 %v1795_v7, %v3657_v16 }
 0x593   : > { %v1823_v47 = vadd.f32 %v1822_v3, %v1814_v41  ;;  %v1816_v15 = vmax.f32 %v1794_v31, 0.0  ;;  %v4313_v3 = vld [vmem:[#allocation43_spill] sm:$0xff] }
 0x594   : > { %v1829_v46 = vadd.f32 %v1828_v21, %v1815_v49  ;;  %v1817_v9 = vmax.f32 %v1796_v13, 0.0  ;;  %v4314_v21 = vld [vmem:[#allocation44_spill] sm:$0xff] }
 0x595   : > { %v1824_v44 = vadd.f32 %v1823_v47, %v1816_v15 }
 0x596   : > { %v1830_v45 = vadd.f32 %v1829_v46, %v1817_v9  ;;  %v1799_v23 = vpop.f32.mrb[32].mxu1 }
 0x597   : > { %v1800_v43 = vadd.f32 %v1799_v23, %v3653_v5  ;;  %v1801_v48 = vpop.f32.mrb[33].mxu1  ;;  %v3042_v23 = vld [vmem:[%s4123_s4] ss:$8 sps:$4 sm:$0xff]  }
 0x598   : > { %v1802_v28 = vadd.f32 %v1801_v48, %v3657_v16  ;;  %v1803_v2 = vpop.f32.mrb[34].mxu1  ;;  %v3044_v48 = vld [vmem:[%s4123_s4 + $0x10] ss:$8 sps:$4 sm:$0xff]  }
 0x599   : > { %v1818_v24 = vmax.f32 %v1800_v43, 0.0  ;;  %v1804_v10 = vpop.f32.mrb[35].mxu1  ;;  %v3043_v43 = vld [vmem:[%s4123_s4 + $0x14] ss:$8 sps:$4 sm:$0xff]   ;;  %v3046_v2 = vld [vmem:[%s4123_s4 + $0x20] ss:$8 sps:$4 sm:$0xff]  }
 0x59a   : > { %v1819_v30 = vmax.f32 %v1802_v28, 0.0  ;;  %v3045_v28 = vld [vmem:[%s4123_s4 + $0x24] ss:$8 sps:$4 sm:$0xff]   ;;  %v3048_v10 = vld [vmem:[%s4123_s4 + $0x30] ss:$8 sps:$4 sm:$0xff]  }
 0x59b   : > { %v1825_v4 = vadd.f32 %v1824_v44, %v1818_v24  ;;  %v3047_v24 = vld [vmem:[%s4123_s4 + $0x34] ss:$8 sps:$4 sm:$0xff]  }
 0x59c   : > { %v1831_v40 = vadd.f32 %v1830_v45, %v1819_v30  ;;  %v3049_v30 = vld [vmem:[%s4123_s4 + $0x44] ss:$8 sps:$4 sm:$0xff]  }
 0x59d   : > { %v1832_v36 = vpack.c.bf16 %v1825_v4, %v1825_v4  ;;  %v3050_v4 = vld [vmem:[%s4123_s4 + $0x40] ss:$8 sps:$4 sm:$0xff]  }
 0x59e   : > { %v1833_v14 = vpack.c.bf16 %v1831_v40, %v1831_v40  ;;  %v3051_v40 = vld [vmem:[%s4123_s4 + $0x54] ss:$8 sps:$4 sm:$0xff]  }
 0x5a0   : > { %1866 = vmatprep.mubr.bf16.mxu0 %v1833_v14  ;;  %v3052_v14 = vld [vmem:[%s4123_s4 + $0x50] ss:$8 sps:$4 sm:$0xff]  }
 0x5a1   : > { %1867 = vmatmul.mubr.bf16.vlgmr.msra.gmra.mrb[40].mxu0 %v1832_v36  ;;  %v3053_v36 = vld [vmem:[%s4123_s4 + $0x64] ss:$8 sps:$4 sm:$0xff]  }
 0x5a2   : > { %2820 = vmatpush3.bf16.msra.mxu0 %v3676_v39  ;;  %2827 = vmatprep.mubr.msk.bf16.mxu0 %vm3069_vm2, %v4254_v34 }
 0x5a3   : > { %2821 = vmatprep.subr.bf16.mxu0 %v4254_v34 }
 0x5a6   : > { %2822 = vmatpush3.bf16.msra.mxu0 %v3682_v6 }
 0x5a7   : > { %2823 = vmatprep.subr.bf16.mxu0 %v4254_v34 }
 0x5aa   : > { %2824 = vmatpush3.bf16.msra.mxu0 %v3691_v19 }
 0x5ab   : > { %2825 = vmatprep.subr.bf16.mxu0 %v4254_v34 }
 0x5ae   : > { %2826 = vmatpush3.bf16.msra.mxu0 %v3698_v17 }
 0x5af   : > { %2831 = vmatprep.subr.bf16.mxu0 %v4254_v34 }
 0x5b1   : > { %2828 = vmatmul.mubr.msk.bf16.vlgmr.msra.gmra.mrb[44].mxu0 %vm1005_vm3, %v3801_v42  ;;  %v3041_v42 = vld [vmem:[%s4123_s4 + $0x4] ss:$8 sps:$4 sm:$0xff]  }
 0x5b2   : > { %2832 = vmatpush3.bf16.msra.mxu0 %v4313_v3  ;;  %2847 = vmatprep.mubr.msk.bf16.mxu0 %vm3069_vm2, %v4254_v34  ;;  %v3054_v3 = vld [vmem:[%s4123_s4 + $0x60] ss:$8 sps:$4 sm:$0xff]  }
 0x5b3   : > { %2833 = vmatprep.subr.bf16.mxu0 %v4254_v34 }
 0x5b6   : > { %2834 = vmatpush3.bf16.msra.mxu0 %v4314_v21  ;;  %v3055_v21 = vld [vmem:[%s4123_s4 + $0x74] ss:$8 sps:$4 sm:$0xff]  }
 0x5b7   : > { %2835 = vmatprep.subr.bf16.mxu0 %v4254_v34 }
 0x5ba   : > { %2836 = vmatpush3.bf16.msra.mxu0 %v3740_v22 }
 0x5bb   : > { %2837 = vmatprep.subr.bf16.mxu0 %v4254_v34 }
 0x5be   : > { %2838 = vmatpush3.bf16.msra.mxu0 %v3747_v26 }
 0x5bf   : > { %2839 = vmatprep.subr.bf16.mxu0 %v4254_v34 }
 0x5c2   : > { %2840 = vmatpush3.bf16.msra.mxu0 %v3753_v27 }
 0x5c3   : > { %2841 = vmatprep.subr.bf16.mxu0 %v4254_v34 }
 0x5c6   : > { %2842 = vmatpush3.bf16.msra.mxu0 %v3760_v32 }
 0x5c7   : > { %2843 = vmatprep.subr.bf16.mxu0 %v4254_v34 }
 0x5ca   : > { %2844 = vmatpush3.bf16.msra.mxu0 %v3768_v35 }
 0x5cb   : > { %2845 = vmatprep.subr.bf16.mxu0 %v4254_v34 }
 0x5ce   : > { %2846 = vmatpush3.bf16.msra.mxu0 %v3774_v37 }
 0x5cf   : > { %2039 = vmatprep.subr.bf16.mxu0 %v3041_v42  ;;  %v3056_v42 = vld [vmem:[%s4123_s4 + $0x70] ss:$8 sps:$4 sm:$0xff]  }
 0x674   : > { %v2711_v33 = vpop.f32.mrb[40].mxu0 }
 0x675   : > { %v2712_v25 = vpop.f32.mrb[41].mxu0 }
 0x676   : > { %v2713_v41 = vadd.f32 %v2712_v25, %v2711_v33  ;;  %v2714_v31 = vpop.f32.mrb[42].mxu0  ;;  %v4324_v33 = vld [vmem:[#allocation36_spill] sm:$0xff]  ;;  %v4325_v25 = vld [vmem:[#allocation37_spill] sm:$0xff] }
 0x677   : > { %v2715_v7 = vpop.f32.mrb[43].mxu0  ;;  %v4327_v31 = vld [vmem:[#allocation39_spill] sm:$0xff] }
 0x678   : > { %v4328_v7 = vld [vmem:[#allocation40_spill] sm:$0xff] }
 0x684   : > { %v1908_v49 = vpop.f32.mrb[44].mxu0 }
 0x685   : > { %v1909_v13 = vadd.f32 %v2713_v41, %v1908_v49  ;;  %v2829_v47 = vpop.f32.mrb[45].mxu0  ;;  %v4326_v41 = vld [vmem:[#allocation38_spill] sm:$0xff]  ;;  %v4329_v49 = vld [vmem:[#allocation41_spill] sm:$0xff] }
 0x686   : > { %v1911_v15 = vpop.f32.mrb[46].mxu0 }
 0x687   : > { %v1914_v46 = vadd.f32 %v1909_v13, %v3783_v50  ;;  %v2830_v9 = vpop.f32.mrb[47].mxu0  ;;  %v4330_v13 = vld [vmem:[#allocation42_spill] sm:$0xff]  ;;  %v4331_v15 = vld [vmem:[#allocation24_spill] sm:$0xff] }
 0x689   : > { %v1915_v44 = vmax.f32 %v1914_v46, 0.0 }
 0x68b   : > { %v1916_v45 = vpack.c.bf16 %v1915_v44, %v1915_v44  ;;  %v4332_v44 = vld [vmem:[#allocation25_spill] sm:$0xff] }
 0x68d   : > { %2848 = vmatmul.mubr.bf16.vlgmr.msra.gmra.mrb[48].mxu0 %v1916_v45 }
 0x68e   : > { %2040 = vmatpush1.bf16.msra.mxu0 %v3042_v23 }
 0x68f   : > { %2041 = vmatprep.subr.bf16.mxu0 %v3043_v43 }
 0x692   : > { %2042 = vmatpush1.bf16.msra.mxu0 %v3044_v48  ;;  %v4333_v48 = vld [vmem:[#allocation11_spill] sm:$0xff] }
 0x693   : > { %2043 = vmatprep.subr.bf16.mxu0 %v3045_v28 }
 0x696   : > { %2044 = vmatpush1.bf16.msra.mxu0 %v3046_v2  ;;  %v4334_v2 = vld [vmem:[#allocation13_spill] sm:$0xff] }
 0x697   : > { %2045 = vmatprep.subr.bf16.mxu0 %v3047_v24 }
 0x69a   : > { %2046 = vmatpush1.bf16.msra.mxu0 %v3048_v10  ;;  %v4335_v10 = vld [vmem:[#allocation16_spill] sm:$0xff] }
 0x69b   : > { %2047 = vmatprep.subr.bf16.mxu0 %v3049_v30 }
 0x69e   : > { %2048 = vmatpush1.bf16.msra.mxu0 %v3050_v4  ;;  %v4336_v4 = vld [vmem:[#allocation18_spill] sm:$0xff] }
 0x69f   : > { %2049 = vmatprep.subr.bf16.mxu0 %v3051_v40 }
 0x6a2   : > { %2050 = vmatpush1.bf16.msra.mxu0 %v3052_v14  ;;  %v4337_v14 = vld [vmem:[#allocation12_spill] sm:$0xff] }
 0x6a3   : > { %2051 = vmatprep.subr.bf16.mxu0 %v3053_v36 }
 0x6a6   : > { %2052 = vmatpush1.bf16.msra.mxu0 %v3054_v3  ;;  %v4338_v3 = vld [vmem:[#allocation14_spill] sm:$0xff] }
 0x6a7   : > { %2053 = vmatprep.subr.bf16.mxu0 %v3055_v21 }
 0x6aa   : > { %2054 = vmatpush1.bf16.msra.mxu0 %v3056_v42  ;;  %v4339_v42 = vld [vmem:[#allocation17_spill] sm:$0xff] }
 0x6ab   : > { %2055 = vmatprep.subr.bf16.mxu0 %v3380_v51 }
 0x6ae   : > { %2056 = vmatpush1.bf16.msra.mxu0 %v3385_v52  ;;  %v4315_v52 = vld [vmem:[#allocation10_spill] sm:$0xff] }
 0x6af   : > { %2057 = vmatprep.subr.bf16.mxu0 %v3391_v53 }
 0x6b2   : > { %2058 = vmatpush1.bf16.msra.mxu0 %v3397_v54 }
 0x6b3   : > { %2059 = vmatprep.subr.bf16.mxu0 %v3404_v55 }
 0x6b6   : > { %2060 = vmatpush1.bf16.msra.mxu0 %v3409_v56 }
 0x6b7   : > { %2061 = vmatprep.subr.bf16.mxu0 %v3415_v57 }
 0x6ba   : > { %2062 = vmatpush1.bf16.msra.mxu0 %v3421_v58 }
 0x6bb   : > { %2063 = vmatprep.subr.bf16.mxu0 %v3427_v59  ;;  %v4316_v59 = vld [vmem:[#allocation28_spill] sm:$0xff] }
 0x6be   : > { %2064 = vmatpush1.bf16.msra.mxu0 %v3433_v60  ;;  %v4317_v60 = vld [vmem:[#allocation29_spill] sm:$0xff] }
 0x6bf   : > { %2065 = vmatprep.subr.bf16.mxu0 %v3439_v61  ;;  %v4318_v61 = vld [vmem:[#allocation30_spill] sm:$0xff] }
 0x6c2   : > { %2066 = vmatpush1.bf16.msra.mxu0 %v3445_v62  ;;  %v4319_v62 = vld [vmem:[#allocation31_spill] sm:$0xff] }
 0x6c3   : > { %2067 = vmatprep.subr.bf16.mxu0 %v3452_v63  ;;  %v4320_v63 = vld [vmem:[#allocation32_spill] sm:$0xff] }
 0x6c6   : > { %2068 = vmatpush1.bf16.msra.mxu0 %v3457_v0  ;;  %v4321_v0 = vld [vmem:[#allocation33_spill] sm:$0xff] }
 0x6c7   : > { %2069 = vmatprep.subr.bf16.mxu0 %v3464_v1  ;;  %v4322_v1 = vld [vmem:[#allocation34_spill] sm:$0xff] }
 0x6ca   : > { %2070 = vmatpush1.bf16.msra.mxu0 %v4274_v20  ;;  %v4323_v20 = vld [vmem:[#allocation35_spill] sm:$0xff] }
 0x6cb   : > { %2883 = vmatprep.subr.bf16.mxu0 %v4254_v34 }
 0x760   : > { %v1951_v51 = vpop.f32.mrb[48].mxu0 }
 0x761   : > { %v1952_v53 = vadd.f32 %v4315_v52, %v1951_v51  ;;  %v2849_v54 = vpop.f32.mrb[49].mxu0 }
 0x762   : > { %v1954_v55 = vpop.f32.mrb[50].mxu0 }
 0x763   : > { %v1957_v56 = vmax.f32 %v1952_v53, 0.0  ;;  %v2850_v57 = vpop.f32.mrb[51].mxu0  ;;  %v4340_v53 = vld [vmem:[#allocation19_spill] sm:$0xff] }
 0x765   : > { %v3968_v58 = vpack.c.bf16 %v1957_v56, %v1957_v56 }
 0x767   : > { %2637 = vmatmul.mubr.msk.bf16.vlgmr.msra.gmra.mrb[36].mxu1 %vm1005_vm3, %v3968_v58 }
 0x768   : > { %2732 = vmatpush3.bf16.msra.mxu1 %v4316_v59 }
 0x769   : > { %2733 = vmatprep.subr.bf16.mxu1 %v4317_v60 }
 0x76c   : > { %2734 = vmatpush3.bf16.msra.mxu1 %v4318_v61 }
 0x76d   : > { %2735 = vmatprep.subr.bf16.mxu1 %v4319_v62 }
 0x770   : > { %2736 = vmatpush3.bf16.msra.mxu1 %v4320_v63 }
 0x771   : > { %2737 = vmatprep.subr.bf16.mxu1 %v4321_v0 }
 0x774   : > { %2738 = vmatpush3.bf16.msra.mxu1 %v4322_v1 }
 0x775   : > { %2739 = vmatprep.subr.bf16.mxu1 %v4323_v20 }
 0x778   : > { %2740 = vmatpush3.bf16.msra.mxu1 %v4324_v33 }
 0x779   : > { %2741 = vmatprep.subr.bf16.mxu1 %v4325_v25 }
 0x77c   : > { %2742 = vmatpush3.bf16.msra.mxu1 %v4326_v41 }
 0x77d   : > { %2743 = vmatprep.subr.bf16.mxu1 %v4327_v31 }
 0x780   : > { %2744 = vmatpush3.bf16.msra.mxu1 %v4328_v7 }
 0x781   : > { %2745 = vmatprep.subr.bf16.mxu1 %v4329_v49 }
 0x784   : > { %2746 = vmatpush3.bf16.msra.mxu1 %v4330_v13 }
 0x785   : > { %2851 = vmatprep.subr.bf16.mxu1 %v4254_v34 }
 0x83a   : > { %v1996_v47 = vpop.f32.mrb[36].mxu1 }
 0x83b   : > { %v1997_v46 = vadd.f32 %v1996_v47, %v4331_v15  ;;  %v1998_v9 = vpop.f32.mrb[37].mxu1 }
 0x83c   : > { %v1999_v45 = vadd.f32 %v1998_v9, %v4332_v44  ;;  %v2000_v23 = vpop.f32.mrb[38].mxu1 }
 0x83d   : > { %v2001_v43 = vpop.f32.mrb[39].mxu1  ;;  %v2003_v28 = vadd.f32 %v1997_v46, %v4333_v48  ;;  %v2005_v24 = vadd.f32 %v1997_v46, %v4334_v2  ;;  %v2007_v30 = vadd.f32 %v1997_v46, %v4335_v10  ;;  %v2009_v40 = vadd.f32 %v1997_v46, %v4336_v4 }
 0x83e   : > { %v2004_v36 = vadd.f32 %v1999_v45, %v4337_v14  ;;  %v2006_v21 = vadd.f32 %v1999_v45, %v4338_v3  ;;  %v2008_v51 = vadd.f32 %v1999_v45, %v4339_v42  ;;  %v2010_v54 = vadd.f32 %v1999_v45, %v4340_v53 }
 0x83f   : > { %v2017_v55 = vmax.f32 %v2003_v28, 0.0  ;;  %v2019_v56 = vmax.f32 %v2005_v24, 0.0  ;;  %v2021_v57 = vmax.f32 %v2007_v30, 0.0  ;;  %v2023_v59 = vmax.f32 %v2009_v40, 0.0 }
 0x840   : > { %v2018_v60 = vmax.f32 %v2004_v36, 0.0  ;;  %v2020_v61 = vmax.f32 %v2006_v21, 0.0  ;;  %v2022_v62 = vmax.f32 %v2008_v51, 0.0  ;;  %v2024_v63 = vmax.f32 %v2010_v54, 0.0 }
 0x841   : > { %v2031_v0 = vpack.c.bf16 %v2019_v56, %v2017_v55  ;;  %v2033_v1 = vpack.c.bf16 %v2023_v59, %v2021_v57  ;;  %v2012_v20 = vadd.f32 %v1999_v45, %v4307_v12  ;;  %v2014_v33 = vadd.f32 %v1999_v45, %v4308_v11 }
 0x842   : > { %v2032_v25 = vpack.c.bf16 %v2020_v61, %v2018_v60  ;;  %v2034_v41 = vpack.c.bf16 %v2024_v63, %v2022_v62  ;;  %v2011_v31 = vadd.f32 %v1997_v46, %v4309_v8  ;;  %v2013_v7 = vadd.f32 %v1997_v46, %v4310_v29 }
 0x843   : > { %v2026_v49 = vmax.f32 %v2012_v20, 0.0  ;;  %v2028_v13 = vmax.f32 %v2014_v33, 0.0  ;;  %v2016_v47 = vadd.f32 %v1999_v45, %v4311_v38  ;;  %v2015_v15 = vadd.f32 %v1997_v46, %v4312_v18 }
 0x844   : > { %2071 = vmatprep.mubr.bf16.mxu0 %v2032_v25  ;;  %v2025_v9 = vmax.f32 %v2011_v31, 0.0  ;;  %v2027_v44 = vmax.f32 %v2013_v7, 0.0 }
 0x845   : > { %2072 = vmatmul.mubr.bf16.vlgmr.msra.gmra.mrb[52].mxu0 %v2031_v0  ;;  %v2036_v23 = vpack.c.bf16 %v2028_v13, %v2026_v49  ;;  %v2030_v11 = vmax.f32 %v2016_v47, 0.0  ;;  %v2029_v8 = vmax.f32 %v2015_v15, 0.0 }
 0x846   : > { %2081 = vmatprep.mubr.bf16.mxu0 %v2034_v41  ;;  %v2035_v12 = vpack.c.bf16 %v2027_v44, %v2025_v9 }
 0x847   : > { %v2038_v43 = vpack.c.bf16 %v2030_v11, %v2030_v11  ;;  %v2037_v29 = vpack.c.bf16 %v2029_v8, %v2029_v8 }
 0x84d   : > { %2082 = vmatmul.mubr.bf16.gmra.mrb[56].mxu0 %v2033_v1 }
 0x84e   : > { %2091 = vmatprep.mubr.bf16.mxu0 %v2036_v23 }
 0x855   : > { %2092 = vmatmul.mubr.bf16.gmra.mrb[60].mxu0 %v2035_v12 }
 0x856   : > { %2101 = vmatprep.mubr.bf16.mxu0 %v2038_v43 }
 0x85d   : > { %2102 = vmatmul.mubr.bf16.gmra.mrb[64].mxu0 %v2037_v29 }
 0x85e   : > { %2891 = vmatprep.mubr.msk.bf16.mxu0 %vm3069_vm2, %v4254_v34 }
 0x918   : > { %v2073_v38 = vpop.f32.mrb[52].mxu0 }
 0x919   : > { %v2074_v18 = vadd.f32 %v2073_v38, %v3653_v5  ;;  %v2075_v46 = vpop.f32.mrb[53].mxu0 }
 0x91a   : > { %v2076_v45 = vadd.f32 %v2075_v46, %v3657_v16  ;;  %v2077_v48 = vpop.f32.mrb[54].mxu0 }
 0x91b   : > { %v2078_v28 = vadd.f32 %v2077_v48, %v3653_v5  ;;  %v2079_v2 = vpop.f32.mrb[55].mxu0  ;;  %v2110_v10 = vmax.f32 %v2074_v18, 0.0 }
 0x91c   : > { %v2080_v24 = vadd.f32 %v2079_v2, %v3657_v16  ;;  %v2111_v4 = vmax.f32 %v2076_v45, 0.0 }
 0x91d   : > { %v2112_v30 = vmax.f32 %v2078_v28, 0.0 }
 0x91e   : > { %v2113_v40 = vmax.f32 %v2080_v24, 0.0 }
 0x91f   : > { %v2124_v14 = vadd.f32 %v2112_v30, %v2110_v10 }
 0x920   : > { %v2130_v36 = vadd.f32 %v2113_v40, %v2111_v4  ;;  %v2083_v3 = vpop.f32.mrb[56].mxu0 }
 0x921   : > { %v2084_v21 = vadd.f32 %v2083_v3, %v3653_v5  ;;  %v2085_v42 = vpop.f32.mrb[57].mxu0 }
 0x922   : > { %v2086_v51 = vadd.f32 %v2085_v42, %v3657_v16  ;;  %v2087_v53 = vpop.f32.mrb[58].mxu0  ;;  %v3023_v42 = vld [vmem:[%s4136_s17] sm:$0xff]  }
 0x923   : > { %v2114_v54 = vmax.f32 %v2084_v21, 0.0  ;;  %v2088_v55 = vadd.f32 %v2087_v53, %v3653_v5  ;;  %v2089_v56 = vpop.f32.mrb[59].mxu0  ;;  %v3026_v53 = vld [vmem:[%s4136_s17 + $0x18] sm:$0xff]  }
 0x924   : > { %v2115_v57 = vmax.f32 %v2086_v51, 0.0  ;;  %v2090_v59 = vadd.f32 %v2089_v56, %v3657_v16  ;;  %v3024_v51 = vld [vmem:[%s4136_s17 + $0x8] sm:$0xff]  }
 0x925   : > { %v2125_v60 = vadd.f32 %v2124_v14, %v2114_v54  ;;  %v2116_v61 = vmax.f32 %v2088_v55, 0.0  ;;  %v3027_v54 = vld [vmem:[%s4136_s17 + $0x20] sm:$0xff]   ;;  %v3028_v55 = vld [vmem:[%s4136_s17 + $0x28] sm:$0xff]  }
 0x926   : > { %v2131_v62 = vadd.f32 %v2130_v36, %v2115_v57  ;;  %v2117_v63 = vmax.f32 %v2090_v59, 0.0 }
 0x927   : > { %v2126_v0 = vadd.f32 %v2125_v60, %v2116_v61 }
 0x928   : > { %v2132_v1 = vadd.f32 %v2131_v62, %v2117_v63  ;;  %v2093_v20 = vpop.f32.mrb[60].mxu0 }
 0x929   : > { %v2094_v33 = vadd.f32 %v2093_v20, %v3653_v5  ;;  %v2095_v25 = vpop.f32.mrb[61].mxu0 }
 0x92a   : > { %v2096_v41 = vadd.f32 %v2095_v25, %v3657_v16  ;;  %v2097_v31 = vpop.f32.mrb[62].mxu0 }
 0x92b   : > { %v2118_v7 = vmax.f32 %v2094_v33, 0.0  ;;  %v2098_v49 = vadd.f32 %v2097_v31, %v3653_v5  ;;  %v2099_v13 = vpop.f32.mrb[63].mxu0 }
 0x92c   : > { %v2119_v47 = vmax.f32 %v2096_v41, 0.0  ;;  %v2100_v15 = vadd.f32 %v2099_v13, %v3657_v16  ;;  %v2645_v13 = vld [vmem:[%s4137_s18] ss:$0 sm:$0xff] }
 0x92d   : > { %v2127_v9 = vadd.f32 %v2126_v0, %v2118_v7  ;;  %v2120_v44 = vmax.f32 %v2098_v49, 0.0  ;;  %v3029_v0 = vld [vmem:[%s4136_s17 + $0x30] sm:$0xff]  }
 0x92e   : > { %v2133_v23 = vadd.f32 %v2132_v1, %v2119_v47  ;;  %v2121_v12 = vmax.f32 %v2100_v15, 0.0  ;;  %v3030_v1 = vld [vmem:[%s4136_s17 + $0x38] sm:$0xff]  }
 0x92f   : > { %v2128_v11 = vadd.f32 %v2127_v9, %v2120_v44 }
 0x930   : > { %v2134_v43 = vadd.f32 %v2133_v23, %v2121_v12  ;;  %v2103_v8 = vpop.f32.mrb[64].mxu0 }
 0x931   : > { %v2104_v29 = vadd.f32 %v2103_v8, %v3653_v5  ;;  %v2105_v38 = vpop.f32.mrb[65].mxu0  ;;  %v3057_v5 = vld [vmem:[%s4132_s13] sm:$0xff]  }
 0x932   : > { %v2106_v18 = vadd.f32 %v2105_v38, %v3657_v16  ;;  %v2107_v46 = vpop.f32.mrb[66].mxu0  ;;  %v3058_v16 = vld [vmem:[%s4132_s13 + $0x8] sm:$0xff]  }
 0x933   : > { %v2122_v45 = vmax.f32 %v2104_v29, 0.0  ;;  %v2108_v48 = vpop.f32.mrb[67].mxu0 }
 0x934   : > { %v2123_v28 = vmax.f32 %v2106_v18, 0.0 }
 0x935   : > { %v2129_v2 = vadd.f32 %v2128_v11, %v2122_v45 }
 0x936   : > { %v2135_v24 = vadd.f32 %v2134_v43, %v2123_v28 }
 0x937   : > { %v2136_v30 = vpack.c.bf16 %v2129_v2, %v2129_v2 }
 0x938   : > { %v2137_v10 = vpack.c.bf16 %v2135_v24, %v2135_v24 }
 0x93a   : > { %2170 = vmatprep.mubr.bf16.mxu1 %v2137_v10 }
 0x93b   : > { %2171 = vmatmul.mubr.bf16.vlgmr.msra.gmra.mrb[40].mxu1 %v2136_v30 }
 0x93c   : > { %2852 = vmatpush3.bf16.msra.mxu1 %v3676_v39  ;;  %2859 = vmatprep.mubr.msk.bf16.mxu1 %vm3069_vm2, %v4254_v34  ;;  %v3019_v39 = vld [vmem:[%s4134_s15] sm:$0xff]  }
 0x93d   : > { %2853 = vmatprep.subr.bf16.mxu1 %v4254_v34  ;;  %2884 = vmatpush3.bf16.msra.mxu0 %v3019_v39 }
 0x93e   : > { %2885 = vmatprep.subr.bf16.mxu0 %v4254_v34 }
 0x940   : > { %2854 = vmatpush3.bf16.msra.mxu1 %v3682_v6  ;;  %v3020_v6 = vld [vmem:[%s4134_s15 + $0x8] sm:$0xff]  }
 0x941   : > { %2855 = vmatprep.subr.bf16.mxu1 %v4254_v34  ;;  %2886 = vmatpush3.bf16.msra.mxu0 %v3020_v6 }
 0x942   : > { %2887 = vmatprep.subr.bf16.mxu0 %v4254_v34 }
 0x944   : > { %2856 = vmatpush3.bf16.msra.mxu1 %v3691_v19  ;;  %v3021_v19 = vld [vmem:[%s4134_s15 + $0x10] sm:$0xff]  }
 0x945   : > { %2857 = vmatprep.subr.bf16.mxu1 %v4254_v34  ;;  %2888 = vmatpush3.bf16.msra.mxu0 %v3021_v19 }
 0x946   : > { %2889 = vmatprep.subr.bf16.mxu0 %v4254_v34 }
 0x948   : > { %2858 = vmatpush3.bf16.msra.mxu1 %v3698_v17  ;;  %v3022_v17 = vld [vmem:[%s4134_s15 + $0x18] sm:$0xff]  }
 0x949   : > { %2863 = vmatprep.subr.bf16.mxu1 %v4254_v34  ;;  %2890 = vmatpush3.bf16.msra.mxu0 %v3022_v17 }
 0x94b   : > { %2860 = vmatmul.mubr.msk.bf16.vlgmr.msra.gmra.mrb[44].mxu1 %vm1005_vm3, %v3968_v58 }
 0x94c   : > { %2864 = vmatpush3.bf16.msra.mxu1 %v3057_v5  ;;  %2879 = vmatprep.mubr.msk.bf16.mxu1 %vm3069_vm2, %v4254_v34 }
 0x94d   : > { %2865 = vmatprep.subr.bf16.mxu1 %v4254_v34 }
 0x950   : > { %2866 = vmatpush3.bf16.msra.mxu1 %v3058_v16 }
 0x951   : > { %2867 = vmatprep.subr.bf16.mxu1 %v4254_v34 }
 0x954   : > { %2868 = vmatpush3.bf16.msra.mxu1 %v3740_v22 }
 0x955   : > { %2869 = vmatprep.subr.bf16.mxu1 %v4254_v34 }
 0x958   : > { %2870 = vmatpush3.bf16.msra.mxu1 %v3747_v26 }
 0x959   : > { %2871 = vmatprep.subr.bf16.mxu1 %v4254_v34 }
 0x95c   : > { %2872 = vmatpush3.bf16.msra.mxu1 %v3753_v27 }
 0x95d   : > { %2873 = vmatprep.subr.bf16.mxu1 %v4254_v34 }
 0x960   : > { %2874 = vmatpush3.bf16.msra.mxu1 %v3760_v32 }
 0x961   : > { %2875 = vmatprep.subr.bf16.mxu1 %v4254_v34 }
 0x964   : > { %2876 = vmatpush3.bf16.msra.mxu1 %v3768_v35 }
 0x965   : > { %2877 = vmatprep.subr.bf16.mxu1 %v4254_v34 }
 0x968   : > { %2878 = vmatpush3.bf16.msra.mxu1 %v3774_v37 }
 0x969   : > { %2895 = vmatprep.subr.bf16.mxu1 %v4254_v34 }
 0xa0e   : > { %v2747_v22 = vpop.f32.mrb[40].mxu1 }
 0xa0f   : > { %v2748_v26 = vpop.f32.mrb[41].mxu1 }
 0xa10   : > { %v2749_v27 = vadd.f32 %v2748_v26, %v2747_v22  ;;  %v2750_v32 = vpop.f32.mrb[42].mxu1 }
 0xa11   : > { %v2751_v35 = vpop.f32.mrb[43].mxu1 }
 0xa1e   : > { %v2212_v37 = vpop.f32.mrb[44].mxu1 }
 0xa1f   : > { %v2213_v58 = vadd.f32 %v2749_v27, %v2212_v37  ;;  %v2861_v4 = vpop.f32.mrb[45].mxu1 }
 0xa20   : > { %v2215_v40 = vpop.f32.mrb[46].mxu1 }
 0xa21   : > { %v2218_v14 = vadd.f32 %v2213_v58, %v3783_v50  ;;  %v2862_v36 = vpop.f32.mrb[47].mxu1  ;;  %v3025_v50 = vld [vmem:[%s4136_s17 + $0x10] sm:$0xff]  }
 0xa23   : > { %v2219_v3 = vmax.f32 %v2218_v14, 0.0 }
 0xa25   : > { %v2220_v21 = vpack.c.bf16 %v2219_v3, %v2219_v3 }
 0xa27   : > { %2880 = vmatmul.mubr.bf16.vlgmr.msra.gmra.mrb[48].mxu1 %v2220_v21 }
 0xa28   : > { %2911 = vmatprep.mubr.msk.bf16.mxu1 %vm3069_vm2, %v4254_v34  ;;  %2896 = vmatpush3.bf16.msra.mxu1 %v3023_v42 }
 0xa29   : > { %2897 = vmatprep.subr.bf16.mxu1 %v4254_v34 }
 0xa2c   : > { %2898 = vmatpush3.bf16.msra.mxu1 %v3024_v51 }
 0xa2d   : > { %2899 = vmatprep.subr.bf16.mxu1 %v4254_v34 }
 0xa30   : > { %2900 = vmatpush3.bf16.msra.mxu1 %v3025_v50 }
 0xa31   : > { %2901 = vmatprep.subr.bf16.mxu1 %v4254_v34 }
 0xa34   : > { %2902 = vmatpush3.bf16.msra.mxu1 %v3026_v53 }
 0xa35   : > { %2903 = vmatprep.subr.bf16.mxu1 %v4254_v34 }
 0xa38   : > { %2904 = vmatpush3.bf16.msra.mxu1 %v3027_v54 }
 0xa39   : > { %2905 = vmatprep.subr.bf16.mxu1 %v4254_v34 }
 0xa3c   : > { %2906 = vmatpush3.bf16.msra.mxu1 %v3028_v55 }
 0xa3d   : > { %2907 = vmatprep.subr.bf16.mxu1 %v4254_v34 }
 0xa40   : > { %2908 = vmatpush3.bf16.msra.mxu1 %v3029_v0 }
 0xa41   : > { %2909 = vmatprep.subr.bf16.mxu1 %v4254_v34 }
 0xa44   : > { %2910 = vmatpush3.bf16.msra.mxu1 %v3030_v1 }
 0xafa   : > { %v2255_v56 = vpop.f32.mrb[48].mxu1 }
 0xafb   : > { %v2256_v57 = vadd.f32 %v4315_v52, %v2255_v56  ;;  %v2881_v59 = vpop.f32.mrb[49].mxu1  ;;  %v2639_v52 = vld [vmem:[%s4135_s16] ss:$0 sm:$0xff] }
 0xafc   : > { %v2258_v60 = vpop.f32.mrb[50].mxu1 }
 0xafd   : > { %v2261_v61 = vmax.f32 %v2256_v57, 0.0  ;;  %v2882_v62 = vpop.f32.mrb[51].mxu1 }
 0xaff   : > { %v2270_v63 = vpack.c.bf16 %v2261_v61, %v2261_v61 }
 0xb01   : > { %2892 = vmatmul.mubr.msk.bf16.vlgmr.msra.gmra.mrb[68].mxu0 %vm1005_vm3, %v2270_v63 }
 0xbd4   : > { %v2339_v20 = vpop.f32.mrb[68].mxu0 }
 0xbd5   : > { %v2340_v33 = vadd.f32 %v2639_v52, %v2339_v20  ;;  %v2893_v25 = vpop.f32.mrb[69].mxu0 }
 0xbd6   : > { %v2342_v41 = vpop.f32.mrb[70].mxu0 }
 0xbd7   : > { %v2345_v31 = vmax.f32 %v2340_v33, 0.0  ;;  %v2894_v7 = vpop.f32.mrb[71].mxu0 }
 0xbd9   : > { %v2362_v49 = vpack.c.bf16 %v2345_v31, %v2345_v31 }
 0xbdb   : > { %2912 = vmatmul.mubr.bf16.vlgmr.msra.gmra.mrb[52].mxu1 %v2362_v49 }
 0xcae   : > { %v2452_v47 = vpop.f32.mrb[52].mxu1 }
 0xcaf   : > { %v2453_v34 = vadd.f32 %v2645_v13, %v2452_v47  ;;  %v2913_v15 = vpop.f32.mrb[53].mxu1 }
 0xcb0   : > { %v2455_v9 = vpop.f32.mrb[54].mxu1 }
 0xcb1   : > { %v2654_v44 = vmul.f32 -1.442695, %v2453_v34  ;;  %v2914_v23 = vpop.f32.mrb[55].mxu1 }
 0xcb3   : > { %3031 = vpow2.f32 %v2654_v44 }
 0xcbd   : > { %v3032_v12 = vpop.eup %3031 }
 0xcbe   : > { %v2461_v11 = vadd.f32 1.0, %v3032_v12 }
 0xcc0   : > { %3033 = vrcp.f32 %v2461_v11 }
 0xcca   : > { %v3034_v43 = vpop.eup %3033 }
 0xccb   : > { %2464 = vst.msk [vmem:[%s634_s22] sm:$0xff] %vm755_vm1, %v3034_v43 }
 0xccc PF: > { %s29_s0 = sadd.s32 1, %s3065_s0  }
 0xccd   : > { %p26_p4 = scmp.ge.s32.totalorder %s29_s0, 4  }
 0xccf   :  { %28 = sbr.rel (!%p26_p4) target bundleno = 5 (0x5), region = 132 }

</bundles_post_ra>
